<compile_context>
chip_gen: v6e
topology: v6e:2x2x1
jax: 0.10.0
libtpu: 0.0.40
codegen_flags: <defaults>
</compile_context>

<pallas_src>
import functools

import jax
import jax.numpy as jnp
from jax import lax
from jax.experimental import pallas as pl
from jax.experimental.pallas import tpu as pltpu

LEAKY_SLOPE = 0.01        # nn.LeakyReLU default
BN_EPS = 1e-5             # nn.BatchNorm2d default
MXU_DTYPE = jnp.bfloat16  # MXU operand dtype (accumulation stays f32)


# --------------------------------------------------------------------------- utils
def _round_up(x, m):
    return ((x + m - 1) // m) * m


def _pad_to(x, axis, size):
    pad = size - x.shape[axis]
    if pad <= 0:
        return x
    widths = [(0, 0)] * x.ndim
    widths[axis] = (0, pad)
    return jnp.pad(x, widths)


def _leaky(y):
    return jnp.where(y > 0, y, LEAKY_SLOPE * y)


def extract_patches(x, kh, kw, sh, sw):
    """x: (B, H, W, C) -> (B, Ho, Wo, kh, kw, C)   (valid windows, plain-JAX glue)."""
    B, H, W, C = x.shape
    Ho = (H - kh) // sh + 1
    Wo = (W - kw) // sw + 1
    r = (jnp.arange(Ho) * sh)[:, None] + jnp.arange(kh)[None, :]      # (Ho, kh)
    c = (jnp.arange(Wo) * sw)[:, None] + jnp.arange(kw)[None, :]      # (Wo, kw)
    p = x[:, r[:, :, None, None], c[None, None, :, :], :]             # (B,Ho,kh,Wo,kw,C)
    return jnp.transpose(p, (0, 1, 3, 2, 4, 5))                        # (B,Ho,Wo,kh,kw,C)


# ------------------------------------------------------------------- Pallas kernels
def _matmul_bias_act_kernel(x_ref, w_ref, b_ref, o_ref, *, act):
    # bf16 x bf16 -> f32 accumulate on the MXU; bias + LeakyReLU epilogue in f32.
    acc = jnp.dot(x_ref[...], w_ref[...], preferred_element_type=jnp.float32)
    acc = acc + b_ref[...]                       # (1, Np) broadcasts
    if act:
        acc = _leaky(acc)
    o_ref[...] = acc.astype(o_ref.dtype)


def matmul_bias_act(x, w, b, act=False, out_dtype=jnp.float32, use_pallas=True):
    """(M,K) @ (K,N) + b with optional fused LeakyReLU.

    MXU operands are cast to bf16; accumulation, bias and activation stay float32.
    Tiled over M only (weights stay resident across grid steps); K and N are
    zero-padded to multiples of 128 so all loads/stores are lane-dense."""
    M, K = x.shape
    N = w.shape[1]
    xc = x.astype(MXU_DTYPE)
    wc = w.astype(MXU_DTYPE)
    bc = b.astype(jnp.float32)

    if not use_pallas:   # pure-JAX mirror of the exact same math (for validation)
        y = jnp.dot(xc, wc, preferred_element_type=jnp.float32) + bc[None, :]
        y = _leaky(y) if act else y
        return y.astype(out_dtype)

    # 2-way M split for the big conv1 matmul (one step per v7x TensorCore, minimal
    # row padding); tiny stages collapse to a single tile automatically.
    n_tiles = 2 if M > 256 else 1
    tm = _round_up(pl.cdiv(M, n_tiles), 16)
    Mp = n_tiles * tm
    Kp = _round_up(K, 128)
    Np = _round_up(N, 128)
    xp = _pad_to(_pad_to(xc, 0, Mp), 1, Kp)
    wp = _pad_to(_pad_to(wc, 0, Kp), 1, Np)
    bp = _pad_to(bc.reshape(1, N), 1, Np)

    out = pl.pallas_call(
        functools.partial(_matmul_bias_act_kernel, act=act),
        out_shape=jax.ShapeDtypeStruct((Mp, Np), out_dtype),
        grid=(n_tiles,),
        in_specs=[
            pl.BlockSpec((tm, Kp), lambda i: (i, 0)),
            pl.BlockSpec((Kp, Np), lambda i: (0, 0)),
            pl.BlockSpec((1, Np), lambda i: (0, 0)),
        ],
        out_specs=pl.BlockSpec((tm, Np), lambda i: (i, 0)),
        compiler_params=pltpu.CompilerParams(dimension_semantics=("parallel",)),
    )(xp, wp, bp)
    return out[:M, :N]


def _chain_kernel(*refs, acts):
    """Chained  h = [LeakyReLU](h @ w_i + b_i)  layers.  All intermediates stay in
    VMEM/vregs; only the final (padded, lane-dense) output is stored."""
    x_ref = refs[0]
    o_ref = refs[-1]
    h = x_ref[...]
    for i, act in enumerate(acts):
        w_ref, b_ref = refs[1 + 2 * i], refs[2 + 2 * i]
        h = jnp.dot(h.astype(MXU_DTYPE), w_ref[...],
                    preferred_element_type=jnp.float32) + b_ref[...]
        if act:
            h = _leaky(h)
    o_ref[...] = h.astype(o_ref.dtype)


def fused_chain(x, layers, use_pallas=True):
    """Fuse a chain of Linear(+LeakyReLU) layers into ONE pallas_call.

    layers: list of (w (K,N), b (N,), act: bool).  All dims are zero-padded to
    multiples of 128 (exact: padded units get bias 0, LeakyReLU(0)=0, and multiply
    zero weight rows downstream).  Used for stage-3(conv+pool+BN+LReLU as matmul)
    + fc1..fc4 (weights < 1 MB stay resident in VMEM; no intermediate HBM traffic)."""
    M = x.shape[0]
    N_out = layers[-1][0].shape[1]

    if not use_pallas:   # pure-JAX mirror of the same math
        h = x.astype(MXU_DTYPE)
        for w, b, act in layers:
            h = jnp.dot(h.astype(MXU_DTYPE), w.astype(MXU_DTYPE),
                        preferred_element_type=jnp.float32) + b.astype(jnp.float32)
            if act:
                h = _leaky(h)
        return h

    dims = [layers[0][0].shape[0]] + [w.shape[1] for w, _, _ in layers]
    pdims = [_round_up(d, 128) for d in dims]                # lane-dense boundaries
    Mp = _round_up(M, 16)

    ops = [_pad_to(_pad_to(x.astype(MXU_DTYPE), 0, Mp), 1, pdims[0])]
    for li, (w, b, _) in enumerate(layers):
        wp = jnp.zeros((pdims[li], pdims[li + 1]), MXU_DTYPE)
        wp = wp.at[:dims[li], :dims[li + 1]].set(w.astype(MXU_DTYPE))
        bp = jnp.zeros((1, pdims[li + 1]), jnp.float32)
        bp = bp.at[0, :dims[li + 1]].set(b.astype(jnp.float32))
        ops += [wp, bp]

    acts = tuple(act for _, _, act in layers)
    full_spec = lambda a: pl.BlockSpec(a.shape, lambda i: (0,) * a.ndim)
    out = pl.pallas_call(
        functools.partial(_chain_kernel, acts=acts),
        out_shape=jax.ShapeDtypeStruct((Mp, pdims[-1]), jnp.float32),
        grid=(1,),
        in_specs=[full_spec(a) for a in ops],
        out_specs=pl.BlockSpec((Mp, pdims[-1]), lambda i: (0, 0)),
    )(*ops)
    return out[:M, :N_out]


# -------------------------------------------------------- fused feature-stage helpers
def _composite_conv_matrices(w_oihw, b, conv_stride, pool_k, pool_s, bn_scale, bn_shift):
    """Conv2d(valid)->AvgPool2d(floor)->BN(eval) collapsed into one matmul operand pair.

    Returns (wm (keh*kew*Cin, Cout), bm (Cout,), keh, kew, stride) where the expanded
    kernel is the average of pool_k^2 stride-shifted copies of the conv kernel and the
    eval-mode BN affine is folded into weights + bias."""
    Cout, Cin, kh, kw = w_oihw.shape
    keh = conv_stride * (pool_k - 1) + kh
    kew = conv_stride * (pool_k - 1) + kw
    we = jnp.zeros((Cout, Cin, keh, kew), jnp.float32)
    for u in range(pool_k):
        for v in range(pool_k):
            we = we.at[:, :, conv_stride * u:conv_stride * u + kh,
                       conv_stride * v:conv_stride * v + kw].add(w_oihw.astype(jnp.float32))
    we = we / float(pool_k * pool_k)
    wm = jnp.transpose(we, (2, 3, 1, 0)).reshape(keh * kew * Cin, Cout)  # (kh,kw,Cin)->Cout
    wm = wm * bn_scale[None, :]
    bm = b.astype(jnp.float32) * bn_scale + bn_shift
    stride = conv_stride * pool_s
    return wm, bm, keh, kew, stride


def _stage_out_dims(H, W, kh, kw, conv_stride, pool_k, pool_s):
    Ho = (H - kh) // conv_stride + 1
    Wo = (W - kw) // conv_stride + 1
    Hp = (Ho - pool_k) // pool_s + 1
    Wp = (Wo - pool_k) // pool_s + 1
    return Hp, Wp


def _stage_im2col(x, keh, kew, stride, Hp, Wp):
    """(B,H,W,Cin) -> (B*Hp*Wp, keh*kew*Cin) bf16 patch matrix for the pooled positions."""
    B, _, _, Cin = x.shape
    patches = extract_patches(x.astype(MXU_DTYPE), keh, kew, stride, stride)[:, :Hp, :Wp]
    return patches.reshape(B * Hp * Wp, keh * kew * Cin)


# ----------------------------------------------------------------------------- model
def init_params(key):
    ks = jax.random.split(key, 24)

    def conv_w(k, cout, cin, kh, kw):
        return jax.random.normal(k, (cout, cin, kh, kw), jnp.float32) / jnp.sqrt(cin * kh * kw)

    def lin_w(k, din, dout):
        return jax.random.normal(k, (din, dout), jnp.float32) / jnp.sqrt(din)

    def bn(kg, kb, c):
        gamma = 1.0 + 0.1 * jax.random.normal(kg, (c,), jnp.float32)
        beta = 0.1 * jax.random.normal(kb, (c,), jnp.float32)
        # eval-mode BN with fresh running stats (mean=0, var=1):
        return gamma / jnp.sqrt(1.0 + BN_EPS), beta

    p = {}
    p["c1_w"] = conv_w(ks[0], 6, 1, 12, 12)
    p["c1_b"] = 0.01 * jax.random.normal(ks[1], (6,), jnp.float32)
    p["bn1_s"], p["bn1_t"] = bn(ks[2], ks[3], 6)

    p["c2_w"] = conv_w(ks[4], 10, 6, 6, 6)
    p["c2_b"] = 0.01 * jax.random.normal(ks[5], (10,), jnp.float32)
    p["bn2_s"], p["bn2_t"] = bn(ks[6], ks[7], 10)

    p["c3_w"] = conv_w(ks[8], 16, 10, 4, 4)
    p["c3_b"] = 0.01 * jax.random.normal(ks[9], (16,), jnp.float32)
    p["bn3_s"], p["bn3_t"] = bn(ks[10], ks[11], 16)

    p["fc1_w"] = lin_w(ks[12], 16, 512)
    p["fc1_b"] = 0.01 * jax.random.normal(ks[13], (512,), jnp.float32)
    p["fc2_w"] = lin_w(ks[14], 512, 256)
    p["fc2_b"] = 0.01 * jax.random.normal(ks[15], (256,), jnp.float32)
    p["fc3_w"] = lin_w(ks[16], 256, 84)
    p["fc3_b"] = 0.01 * jax.random.normal(ks[17], (84,), jnp.float32)
    p["fc4_w"] = lin_w(ks[18], 84, 2)
    p["fc4_b"] = 0.01 * jax.random.normal(ks[19], (2,), jnp.float32)
    return p


_STAGES = [   # (conv name, bn name, conv_stride, pool_k, pool_s)
    ("c1", "bn1", 3, 2, 2),
    ("c2", "bn2", 2, 3, 2),
    ("c3", "bn3", 1, 2, 2),
]


def complex_cnn_forward(params, x_nchw, use_pallas=True):
    """ComplexCNN forward (eval mode). 3 pallas_calls total: one fused
    conv+pool+BN+LReLU matmul for stages 1-2, plus stage 3 fused with the 4-layer
    classifier into a single chained-matmul call."""
    x = jnp.transpose(x_nchw, (0, 2, 3, 1)).astype(jnp.float32)       # NCHW -> NHWC

    # ---- stages 1 & 2: one fused Pallas matmul each (bf16 outputs) ----
    for cname, bname, cs, pk, ps in _STAGES[:2]:
        w, b = params[cname + "_w"], params[cname + "_b"]
        sc, sh = params[bname + "_s"], params[bname + "_t"]
        wm, bm, keh, kew, stride = _composite_conv_matrices(w, b, cs, pk, ps, sc, sh)
        B, H, W, _ = x.shape
        Hp, Wp = _stage_out_dims(H, W, w.shape[2], w.shape[3], cs, pk, ps)
        pm = _stage_im2col(x, keh, kew, stride, Hp, Wp)
        y = matmul_bias_act(pm, wm, bm, act=True, out_dtype=MXU_DTYPE,
                            use_pallas=use_pallas)
        x = y.reshape(B, Hp, Wp, w.shape[0])

    # ---- stage 3 + classifier ----
    cname, bname, cs, pk, ps = _STAGES[2]
    w, b = params[cname + "_w"], params[cname + "_b"]
    sc, sh = params[bname + "_s"], params[bname + "_t"]
    wm, bm, keh, kew, stride = _composite_conv_matrices(w, b, cs, pk, ps, sc, sh)
    B, H, W, _ = x.shape
    Hp, Wp = _stage_out_dims(H, W, w.shape[2], w.shape[3], cs, pk, ps)
    pm = _stage_im2col(x, keh, kew, stride, Hp, Wp)

    fc_layers = [(params[f"fc{i}_w"], params[f"fc{i}_b"], i < 4) for i in range(1, 5)]

    # TODO(synk): training-mode (batch-statistics) BatchNorm / active Dropout not implemented.
    if Hp == 1 and Wp == 1:
        # Pooled stage-3 output is 1x1 spatial -> its matmul output IS the flattened
        # feature vector (channel order), so stage 3 joins the classifier chain.
        return fused_chain(pm, [(wm, bm, True)] + fc_layers, use_pallas)

    # Fallback for other image sizes: separate stage-3 call, NCHW-order flatten.
    y = matmul_bias_act(pm, wm, bm, act=True, out_dtype=MXU_DTYPE, use_pallas=use_pallas)
    y = y.reshape(B, Hp, Wp, w.shape[0])
    feats = jnp.transpose(y, (0, 3, 1, 2)).reshape(B, -1)
    return fused_chain(feats, fc_layers, use_pallas)


def reference_forward(params, x_nchw):
    """Independent, un-fused f32/HIGHEST evaluation of the original PyTorch graph
    (Conv2d -> AvgPool2d -> BN(eval) -> LeakyReLU x3 -> Flatten -> 4x Linear).
    Validates both the conv+pool fusion identity and the Pallas kernels."""
    x = jnp.transpose(x_nchw, (0, 2, 3, 1)).astype(jnp.float32)

    def stage(x, w, b, s, pk, ps, scale, shift):
        y = lax.conv_general_dilated(
            x, jnp.transpose(w, (2, 3, 1, 0)).astype(jnp.float32),
            window_strides=(s, s), padding="VALID",
            dimension_numbers=("NHWC", "HWIO", "NHWC"),
            precision=lax.Precision.HIGHEST) + b
        y = lax.reduce_window(y, 0.0, lax.add, (1, pk, pk, 1), (1, ps, ps, 1), "VALID")
        y = y / float(pk * pk)
        y = y * scale + shift
        return _leaky(y)

    x = stage(x, params["c1_w"], params["c1_b"], 3, 2, 2, params["bn1_s"], params["bn1_t"])
    x = stage(x, params["c2_w"], params["c2_b"], 2, 3, 2, params["bn2_s"], params["bn2_t"])
    x = stage(x, params["c3_w"], params["c3_b"], 1, 2, 2, params["bn3_s"], params["bn3_t"])

    h = jnp.transpose(x, (0, 3, 1, 2)).reshape(x.shape[0], -1)
    for i, name in enumerate(["fc1", "fc2", "fc3", "fc4"]):
        h = jnp.dot(h, params[name + "_w"],
                    precision=lax.Precision.HIGHEST,
                    preferred_element_type=jnp.float32) + params[name + "_b"]
        if i < 3:
            h = _leaky(h)
    return h


if __name__ == "__main__":
    key = jax.random.PRNGKey(0)
    pkey, xkey = jax.random.split(key)

    params = init_params(pkey)
    # BATCH_SIZE=2, single channel, IMAGE_RESIZE=168 (valid for this conv/pool stack)
    x = jax.random.normal(xkey, (2, 1, 168, 168), jnp.float32)

    fwd = jax.jit(functools.partial(complex_cnn_forward, use_pallas=True))
    out = jax.block_until_ready(fwd(params, x))
    assert out.shape == (2, 2), out.shape
    assert bool(jnp.all(jnp.isfinite(out)))

    # Tight check: identical math (bf16 operands, f32 accumulation) in pure JAX —
    # validates the Pallas plumbing (BlockSpecs, padding, fusion) precisely.
    same_math = jax.jit(functools.partial(complex_cnn_forward, use_pallas=False))(params, x)
    assert bool(jnp.allclose(out, same_math, atol=5e-3, rtol=5e-3)), (out, same_math)

    # Loose check: independent direct f32/HIGHEST evaluation of the original graph —
    # validates the conv+pool/BN fusion identity; slack absorbs bf16 MXU rounding.
    ref = jax.jit(reference_forward)(params, x)
    assert bool(jnp.allclose(out, ref, atol=5e-2, rtol=5e-2)), (out, ref)

    print("KERNEL_OK")
</pallas_src>

<mosaic_0001>
module attributes {stable_mosaic.version = 11 : i64} {
  func.func @_matmul_bias_act_kernel(%arg0: i32, %arg1: memref<688x256xbf16, #tpu.memory_space<vmem>>, %arg2: memref<256x128xbf16, #tpu.memory_space<vmem>>, %arg3: memref<1x128xf32, #tpu.memory_space<vmem>>, %arg4: memref<688x128xbf16, #tpu.memory_space<vmem>>) attributes {dimension_semantics = [#tpu.dimension_semantics<parallel>], iteration_bounds = array<i64: 2>, scalar_prefetch = 0 : i64, scratch_operands = 0 : i64, tpu.core_type = #tpu.core_type<tc>, window_params = [{transform_indices = @transform_0, window_bounds = array<i64: 688, 256>}, {pipeline_mode = #tpu.pipeline_mode<synchronous>, transform_indices = @transform_1, window_bounds = array<i64: 256, 128>}, {pipeline_mode = #tpu.pipeline_mode<synchronous>, transform_indices = @transform_2, window_bounds = array<i64: 1, 128>}, {transform_indices = @transform_3, window_bounds = array<i64: 688, 128>}]} {
    %c0 = arith.constant 0 : index
    %c0_0 = arith.constant 0 : index
    %0 = vector.load %arg1[%c0, %c0_0] : memref<688x256xbf16, #tpu.memory_space<vmem>>, vector<688x256xbf16>
    %c0_1 = arith.constant 0 : index
    %c0_2 = arith.constant 0 : index
    %1 = vector.load %arg2[%c0_1, %c0_2] : memref<256x128xbf16, #tpu.memory_space<vmem>>, vector<256x128xbf16>
    %cst = arith.constant dense<0.000000e+00> : vector<688x128xf32>
    %2 = tpu.matmul %0, %1, %cst {dimension_numbers = #tpu.dot_dimension_numbers<[1], [0], [0], [1], [0, 0, 1, 1], [], []>} : vector<688x256xbf16>, vector<256x128xbf16>, vector<688x128xf32> -> vector<688x128xf32>
    %c0_3 = arith.constant 0 : index
    %c0_4 = arith.constant 0 : index
    %3 = vector.load %arg3[%c0_3, %c0_4] : memref<1x128xf32, #tpu.memory_space<vmem>>, vector<1x128xf32>
    %4 = vector.broadcast %3 : vector<1x128xf32> to vector<688x128xf32>
    %5 = arith.addf %2, %4 : vector<688x128xf32>
    %cst_5 = arith.constant 0.000000e+00 : f32
    %6 = vector.broadcast %cst_5 : f32 to vector<688x128xf32>
    %7 = arith.cmpf ogt, %5, %6 : vector<688x128xf32>
    %cst_6 = arith.constant 0.00999999977 : f32
    %8 = vector.broadcast %cst_6 : f32 to vector<688x128xf32>
    %9 = arith.mulf %8, %5 : vector<688x128xf32>
    %10 = arith.select %7, %5, %9 : vector<688x128xi1>, vector<688x128xf32>
    %11 = arith.truncf %10 : vector<688x128xf32> to vector<688x128xbf16>
    %c0_7 = arith.constant 0 : index
    %c0_8 = arith.constant 0 : index
    %12 = vector.load %arg4[%c0_7, %c0_8] : memref<688x128xbf16, #tpu.memory_space<vmem>>, vector<688x128xbf16>
    tpu.vector_store %arg4[%c0_7, %c0_8], %11 {strides = array<i32>} : memref<688x128xbf16, #tpu.memory_space<vmem>>, vector<688x128xbf16>,
    return
  }
  func.func @transform_0(%arg0: i32) -> (i32, i32) {
    %c0_i32 = arith.constant 0 : i32
    %c0_i32_0 = arith.constant 0 : i32
    return %arg0, %c0_i32 : i32, i32
  }
  func.func @transform_1(%arg0: i32) -> (i32, i32) {
    %c0_i32 = arith.constant 0 : i32
    %c0_i32_0 = arith.constant 0 : i32
    %c0_i32_1 = arith.constant 0 : i32
    return %c0_i32, %c0_i32_0 : i32, i32
  }
  func.func @transform_2(%arg0: i32) -> (i32, i32) {
    %c0_i32 = arith.constant 0 : i32
    %c0_i32_0 = arith.constant 0 : i32
    %c0_i32_1 = arith.constant 0 : i32
    return %c0_i32, %c0_i32_0 : i32, i32
  }
  func.func @transform_3(%arg0: i32) -> (i32, i32) {
    %c0_i32 = arith.constant 0 : i32
    %c0_i32_0 = arith.constant 0 : i32
    return %arg0, %c0_i32 : i32, i32
  }
}

module attributes {stable_mosaic.version = 11 : i64} {
  func.func @_matmul_bias_act_kernel(%arg0: i32, %arg1: memref<64x640xbf16, #tpu.memory_space<vmem>>, %arg2: memref<640x128xbf16, #tpu.memory_space<vmem>>, %arg3: memref<1x128xf32, #tpu.memory_space<vmem>>, %arg4: memref<64x128xbf16, #tpu.memory_space<vmem>>) attributes {dimension_semantics = [#tpu.dimension_semantics<parallel>], iteration_bounds = array<i64: 1>, scalar_prefetch = 0 : i64, scratch_operands = 0 : i64, tpu.core_type = #tpu.core_type<tc>, window_params = [{transform_indices = @transform_0, window_bounds = array<i64: 64, 640>}, {pipeline_mode = #tpu.pipeline_mode<synchronous>, transform_indices = @transform_1, window_bounds = array<i64: 640, 128>}, {pipeline_mode = #tpu.pipeline_mode<synchronous>, transform_indices = @transform_2, window_bounds = array<i64: 1, 128>}, {transform_indices = @transform_3, window_bounds = array<i64: 64, 128>}]} {
    %c0 = arith.constant 0 : index
    %c0_0 = arith.constant 0 : index
    %0 = vector.load %arg1[%c0, %c0_0] : memref<64x640xbf16, #tpu.memory_space<vmem>>, vector<64x640xbf16>
    %c0_1 = arith.constant 0 : index
    %c0_2 = arith.constant 0 : index
    %1 = vector.load %arg2[%c0_1, %c0_2] : memref<640x128xbf16, #tpu.memory_space<vmem>>, vector<640x128xbf16>
    %cst = arith.constant dense<0.000000e+00> : vector<64x128xf32>
    %2 = tpu.matmul %0, %1, %cst {dimension_numbers = #tpu.dot_dimension_numbers<[1], [0], [0], [1], [0, 0, 1, 1], [], []>} : vector<64x640xbf16>, vector<640x128xbf16>, vector<64x128xf32> -> vector<64x128xf32>
    %c0_3 = arith.constant 0 : index
    %c0_4 = arith.constant 0 : index
    %3 = vector.load %arg3[%c0_3, %c0_4] : memref<1x128xf32, #tpu.memory_space<vmem>>, vector<1x128xf32>
    %4 = vector.broadcast %3 : vector<1x128xf32> to vector<64x128xf32>
    %5 = arith.addf %2, %4 : vector<64x128xf32>
    %cst_5 = arith.constant 0.000000e+00 : f32
    %6 = vector.broadcast %cst_5 : f32 to vector<64x128xf32>
    %7 = arith.cmpf ogt, %5, %6 : vector<64x128xf32>
    %cst_6 = arith.constant 0.00999999977 : f32
    %8 = vector.broadcast %cst_6 : f32 to vector<64x128xf32>
    %9 = arith.mulf %8, %5 : vector<64x128xf32>
    %10 = arith.select %7, %5, %9 : vector<64x128xi1>, vector<64x128xf32>
    %11 = arith.truncf %10 : vector<64x128xf32> to vector<64x128xbf16>
    %c0_7 = arith.constant 0 : index
    %c0_8 = arith.constant 0 : index
    %12 = vector.load %arg4[%c0_7, %c0_8] : memref<64x128xbf16, #tpu.memory_space<vmem>>, vector<64x128xbf16>
    tpu.vector_store %arg4[%c0_7, %c0_8], %11 {strides = array<i32>} : memref<64x128xbf16, #tpu.memory_space<vmem>>, vector<64x128xbf16>,
    return
  }
  func.func @transform_0(%arg0: i32) -> (i32, i32) {
    %c0_i32 = arith.constant 0 : i32
    %c0_i32_0 = arith.constant 0 : i32
    return %arg0, %c0_i32 : i32, i32
  }
  func.func @transform_1(%arg0: i32) -> (i32, i32) {
    %c0_i32 = arith.constant 0 : i32
    %c0_i32_0 = arith.constant 0 : i32
    %c0_i32_1 = arith.constant 0 : i32
    return %c0_i32, %c0_i32_0 : i32, i32
  }
  func.func @transform_2(%arg0: i32) -> (i32, i32) {
    %c0_i32 = arith.constant 0 : i32
    %c0_i32_0 = arith.constant 0 : i32
    %c0_i32_1 = arith.constant 0 : i32
    return %c0_i32, %c0_i32_0 : i32, i32
  }
  func.func @transform_3(%arg0: i32) -> (i32, i32) {
    %c0_i32 = arith.constant 0 : i32
    %c0_i32_0 = arith.constant 0 : i32
    return %arg0, %c0_i32 : i32, i32
  }
}

module attributes {stable_mosaic.version = 11 : i64} {
  func.func @_chain_kernel(%arg0: i32, %arg1: memref<16x256xbf16, #tpu.memory_space<vmem>>, %arg2: memref<256x128xbf16, #tpu.memory_space<vmem>>, %arg3: memref<1x128xf32, #tpu.memory_space<vmem>>, %arg4: memref<128x512xbf16, #tpu.memory_space<vmem>>, %arg5: memref<1x512xf32, #tpu.memory_space<vmem>>, %arg6: memref<512x256xbf16, #tpu.memory_space<vmem>>, %arg7: memref<1x256xf32, #tpu.memory_space<vmem>>, %arg8: memref<256x128xbf16, #tpu.memory_space<vmem>>, %arg9: memref<1x128xf32, #tpu.memory_space<vmem>>, %arg10: memref<128x128xbf16, #tpu.memory_space<vmem>>, %arg11: memref<1x128xf32, #tpu.memory_space<vmem>>, %arg12: memref<16x128xf32, #tpu.memory_space<vmem>>) attributes {dimension_semantics = [#tpu.dimension_semantics<arbitrary>], iteration_bounds = array<i64: 1>, scalar_prefetch = 0 : i64, scratch_operands = 0 : i64, tpu.core_type = #tpu.core_type<tc>, window_params = [{pipeline_mode = #tpu.pipeline_mode<synchronous>, transform_indices = @transform_0, window_bounds = array<i64: 16, 256>}, {pipeline_mode = #tpu.pipeline_mode<synchronous>, transform_indices = @transform_1, window_bounds = array<i64: 256, 128>}, {pipeline_mode = #tpu.pipeline_mode<synchronous>, transform_indices = @transform_2, window_bounds = array<i64: 1, 128>}, {pipeline_mode = #tpu.pipeline_mode<synchronous>, transform_indices = @transform_3, window_bounds = array<i64: 128, 512>}, {pipeline_mode = #tpu.pipeline_mode<synchronous>, transform_indices = @transform_4, window_bounds = array<i64: 1, 512>}, {pipeline_mode = #tpu.pipeline_mode<synchronous>, transform_indices = @transform_5, window_bounds = array<i64: 512, 256>}, {pipeline_mode = #tpu.pipeline_mode<synchronous>, transform_indices = @transform_6, window_bounds = array<i64: 1, 256>}, {pipeline_mode = #tpu.pipeline_mode<synchronous>, transform_indices = @transform_7, window_bounds = array<i64: 256, 128>}, {pipeline_mode = #tpu.pipeline_mode<synchronous>, transform_indices = @transform_8, window_bounds = array<i64: 1, 128>}, {pipeline_mode = #tpu.pipeline_mode<synchronous>, transform_indices = @transform_9, window_bounds = array<i64: 128, 128>}, {pipeline_mode = #tpu.pipeline_mode<synchronous>, transform_indices = @transform_10, window_bounds = array<i64: 1, 128>}, {pipeline_mode = #tpu.pipeline_mode<synchronous>, transform_indices = @transform_11, window_bounds = array<i64: 16, 128>}]} {
    %c0 = arith.constant 0 : index
    %c0_0 = arith.constant 0 : index
    %0 = vector.load %arg1[%c0, %c0_0] : memref<16x256xbf16, #tpu.memory_space<vmem>>, vector<16x256xbf16>
    %c0_1 = arith.constant 0 : index
    %c0_2 = arith.constant 0 : index
    %1 = vector.load %arg2[%c0_1, %c0_2] : memref<256x128xbf16, #tpu.memory_space<vmem>>, vector<256x128xbf16>
    %cst = arith.constant dense<0.000000e+00> : vector<16x128xf32>
    %2 = tpu.matmul %0, %1, %cst {dimension_numbers = #tpu.dot_dimension_numbers<[1], [0], [0], [1], [0, 0, 1, 1], [], []>} : vector<16x256xbf16>, vector<256x128xbf16>, vector<16x128xf32> -> vector<16x128xf32>
    %c0_3 = arith.constant 0 : index
    %c0_4 = arith.constant 0 : index
    %3 = vector.load %arg3[%c0_3, %c0_4] : memref<1x128xf32, #tpu.memory_space<vmem>>, vector<1x128xf32>
    %4 = vector.broadcast %3 : vector<1x128xf32> to vector<16x128xf32>
    %5 = arith.addf %2, %4 : vector<16x128xf32>
    %cst_5 = arith.constant 0.000000e+00 : f32
    %6 = vector.broadcast %cst_5 : f32 to vector<16x128xf32>
    %7 = arith.cmpf ogt, %5, %6 : vector<16x128xf32>
    %cst_6 = arith.constant 0.00999999977 : f32
    %8 = vector.broadcast %cst_6 : f32 to vector<16x128xf32>
    %9 = arith.mulf %8, %5 : vector<16x128xf32>
    %10 = arith.select %7, %5, %9 : vector<16x128xi1>, vector<16x128xf32>
    %11 = arith.truncf %10 : vector<16x128xf32> to vector<16x128xbf16>
    %c0_7 = arith.constant 0 : index
    %c0_8 = arith.constant 0 : index
    %12 = vector.load %arg4[%c0_7, %c0_8] : memref<128x512xbf16, #tpu.memory_space<vmem>>, vector<128x512xbf16>
    %cst_9 = arith.constant dense<0.000000e+00> : vector<16x512xf32>
    %13 = tpu.matmul %11, %12, %cst_9 {dimension_numbers = #tpu.dot_dimension_numbers<[1], [0], [0], [1], [0, 0, 1, 1], [], []>} : vector<16x128xbf16>, vector<128x512xbf16>, vector<16x512xf32> -> vector<16x512xf32>
    %c0_10 = arith.constant 0 : index
    %c0_11 = arith.constant 0 : index
    %14 = vector.load %arg5[%c0_10, %c0_11] : memref<1x512xf32, #tpu.memory_space<vmem>>, vector<1x512xf32>
    %15 = vector.broadcast %14 : vector<1x512xf32> to vector<16x512xf32>
    %16 = arith.addf %13, %15 : vector<16x512xf32>
    %cst_12 = arith.constant 0.000000e+00 : f32
    %17 = vector.broadcast %cst_12 : f32 to vector<16x512xf32>
    %18 = arith.cmpf ogt, %16, %17 : vector<16x512xf32>
    %cst_13 = arith.constant 0.00999999977 : f32
    %19 = vector.broadcast %cst_13 : f32 to vector<16x512xf32>
    %20 = arith.mulf %19, %16 : vector<16x512xf32>
    %21 = arith.select %18, %16, %20 : vector<16x512xi1>, vector<16x512xf32>
    %22 = arith.truncf %21 : vector<16x512xf32> to vector<16x512xbf16>
    %c0_14 = arith.constant 0 : index
    %c0_15 = arith.constant 0 : index
    %23 = vector.load %arg6[%c0_14, %c0_15] : memref<512x256xbf16, #tpu.memory_space<vmem>>, vector<512x256xbf16>
    %cst_16 = arith.constant dense<0.000000e+00> : vector<16x256xf32>
    %24 = tpu.matmul %22, %23, %cst_16 {dimension_numbers = #tpu.dot_dimension_numbers<[1], [0], [0], [1], [0, 0, 1, 1], [], []>} : vector<16x512xbf16>, vector<512x256xbf16>, vector<16x256xf32> -> vector<16x256xf32>
    %c0_17 = arith.constant 0 : index
    %c0_18 = arith.constant 0 : index
    %25 = vector.load %arg7[%c0_17, %c0_18] : memref<1x256xf32, #tpu.memory_space<vmem>>, vector<1x256xf32>
    %26 = vector.broadcast %25 : vector<1x256xf32> to vector<16x256xf32>
    %27 = arith.addf %24, %26 : vector<16x256xf32>
    %cst_19 = arith.constant 0.000000e+00 : f32
    %28 = vector.broadcast %cst_19 : f32 to vector<16x256xf32>
    %29 = arith.cmpf ogt, %27, %28 : vector<16x256xf32>
    %cst_20 = arith.constant 0.00999999977 : f32
    %30 = vector.broadcast %cst_20 : f32 to vector<16x256xf32>
    %31 = arith.mulf %30, %27 : vector<16x256xf32>
    %32 = arith.select %29, %27, %31 : vector<16x256xi1>, vector<16x256xf32>
    %33 = arith.truncf %32 : vector<16x256xf32> to vector<16x256xbf16>
    %c0_21 = arith.constant 0 : index
    %c0_22 = arith.constant 0 : index
    %34 = vector.load %arg8[%c0_21, %c0_22] : memref<256x128xbf16, #tpu.memory_space<vmem>>, vector<256x128xbf16>
    %cst_23 = arith.constant dense<0.000000e+00> : vector<16x128xf32>
    %35 = tpu.matmul %33, %34, %cst_23 {dimension_numbers = #tpu.dot_dimension_numbers<[1], [0], [0], [1], [0, 0, 1, 1], [], []>} : vector<16x256xbf16>, vector<256x128xbf16>, vector<16x128xf32> -> vector<16x128xf32>
    %c0_24 = arith.constant 0 : index
    %c0_25 = arith.constant 0 : index
    %36 = vector.load %arg9[%c0_24, %c0_25] : memref<1x128xf32, #tpu.memory_space<vmem>>, vector<1x128xf32>
    %37 = vector.broadcast %36 : vector<1x128xf32> to vector<16x128xf32>
    %38 = arith.addf %35, %37 : vector<16x128xf32>
    %cst_26 = arith.constant 0.000000e+00 : f32
    %39 = vector.broadcast %cst_26 : f32 to vector<16x128xf32>
    %40 = arith.cmpf ogt, %38, %39 : vector<16x128xf32>
    %cst_27 = arith.constant 0.00999999977 : f32
    %41 = vector.broadcast %cst_27 : f32 to vector<16x128xf32>
    %42 = arith.mulf %41, %38 : vector<16x128xf32>
    %43 = arith.select %40, %38, %42 : vector<16x128xi1>, vector<16x128xf32>
    %44 = arith.truncf %43 : vector<16x128xf32> to vector<16x128xbf16>
    %c0_28 = arith.constant 0 : index
    %c0_29 = arith.constant 0 : index
    %45 = vector.load %arg10[%c0_28, %c0_29] : memref<128x128xbf16, #tpu.memory_space<vmem>>, vector<128x128xbf16>
    %cst_30 = arith.constant dense<0.000000e+00> : vector<16x128xf32>
    %46 = tpu.matmul %44, %45, %cst_30 {dimension_numbers = #tpu.dot_dimension_numbers<[1], [0], [0], [1], [0, 0, 1, 1], [], []>} : vector<16x128xbf16>, vector<128x128xbf16>, vector<16x128xf32> -> vector<16x128xf32>
    %c0_31 = arith.constant 0 : index
    %c0_32 = arith.constant 0 : index
    %47 = vector.load %arg11[%c0_31, %c0_32] : memref<1x128xf32, #tpu.memory_space<vmem>>, vector<1x128xf32>
    %48 = vector.broadcast %47 : vector<1x128xf32> to vector<16x128xf32>
    %49 = arith.addf %46, %48 : vector<16x128xf32>
    %c0_33 = arith.constant 0 : index
    %c0_34 = arith.constant 0 : index
    %50 = vector.load %arg12[%c0_33, %c0_34] : memref<16x128xf32, #tpu.memory_space<vmem>>, vector<16x128xf32>
    tpu.vector_store %arg12[%c0_33, %c0_34], %49 {strides = array<i32>} : memref<16x128xf32, #tpu.memory_space<vmem>>, vector<16x128xf32>,
    return
  }
  func.func @transform_0(%arg0: i32) -> (i32, i32) {
    %c0_i32 = arith.constant 0 : i32
    %c0_i32_0 = arith.constant 0 : i32
    %c0_i32_1 = arith.constant 0 : i32
    return %c0_i32, %c0_i32_0 : i32, i32
  }
  func.func @transform_1(%arg0: i32) -> (i32, i32) {
    %c0_i32 = arith.constant 0 : i32
    %c0_i32_0 = arith.constant 0 : i32
    %c0_i32_1 = arith.constant 0 : i32
    return %c0_i32, %c0_i32_0 : i32, i32
  }
  func.func @transform_2(%arg0: i32) -> (i32, i32) {
    %c0_i32 = arith.constant 0 : i32
    %c0_i32_0 = arith.constant 0 : i32
    %c0_i32_1 = arith.constant 0 : i32
    return %c0_i32, %c0_i32_0 : i32, i32
  }
  func.func @transform_3(%arg0: i32) -> (i32, i32) {
    %c0_i32 = arith.constant 0 : i32
    %c0_i32_0 = arith.constant 0 : i32
    %c0_i32_1 = arith.constant 0 : i32
    return %c0_i32, %c0_i32_0 : i32, i32
  }
  func.func @transform_4(%arg0: i32) -> (i32, i32) {
    %c0_i32 = arith.constant 0 : i32
    %c0_i32_0 = arith.constant 0 : i32
    %c0_i32_1 = arith.constant 0 : i32
    return %c0_i32, %c0_i32_0 : i32, i32
  }
  func.func @transform_5(%arg0: i32) -> (i32, i32) {
    %c0_i32 = arith.constant 0 : i32
    %c0_i32_0 = arith.constant 0 : i32
    %c0_i32_1 = arith.constant 0 : i32
    return %c0_i32, %c0_i32_0 : i32, i32
  }
  func.func @transform_6(%arg0: i32) -> (i32, i32) {
    %c0_i32 = arith.constant 0 : i32
    %c0_i32_0 = arith.constant 0 : i32
    %c0_i32_1 = arith.constant 0 : i32
    return %c0_i32, %c0_i32_0 : i32, i32
  }
  func.func @transform_7(%arg0: i32) -> (i32, i32) {
    %c0_i32 = arith.constant 0 : i32
    %c0_i32_0 = arith.constant 0 : i32
    %c0_i32_1 = arith.constant 0 : i32
    return %c0_i32, %c0_i32_0 : i32, i32
  }
  func.func @transform_8(%arg0: i32) -> (i32, i32) {
    %c0_i32 = arith.constant 0 : i32
    %c0_i32_0 = arith.constant 0 : i32
    %c0_i32_1 = arith.constant 0 : i32
    return %c0_i32, %c0_i32_0 : i32, i32
  }
  func.func @transform_9(%arg0: i32) -> (i32, i32) {
    %c0_i32 = arith.constant 0 : i32
    %c0_i32_0 = arith.constant 0 : i32
    %c0_i32_1 = arith.constant 0 : i32
    return %c0_i32, %c0_i32_0 : i32, i32
  }
  func.func @transform_10(%arg0: i32) -> (i32, i32) {
    %c0_i32 = arith.constant 0 : i32
    %c0_i32_0 = arith.constant 0 : i32
    %c0_i32_1 = arith.constant 0 : i32
    return %c0_i32, %c0_i32_0 : i32, i32
  }
  func.func @transform_11(%arg0: i32) -> (i32, i32) {
    %c0_i32 = arith.constant 0 : i32
    %c0_i32_0 = arith.constant 0 : i32
    %c0_i32_1 = arith.constant 0 : i32
    return %c0_i32, %c0_i32_0 : i32, i32
  }
}

</mosaic_0001>

<bundles_post_ra>
// kernel: complex_cnn_forward.3
= control target key start
LH: loop header
LB: loop body
LE: loop exit
PB: predicated region body
PF: predicated region fallthrough
CT: control target
= control target key end

     0   :  { %s2709_s12 = smov 0   ;;  %s3039_s0 = inlined_call_operand.vmem [shape: bf16[1376,256], index: 0, kind: input, shape index: {}]   ;;  %s3040_s1 = inlined_call_operand.vmem [shape: bf16[256,128], index: 1, kind: input, shape index: {}]   ;;  %s3041_s2 = inlined_call_operand.vmem [shape: f32[1,128], index: 2, kind: input, shape index: {}]   ;;  %s3042_s3 = inlined_call_operand.vmem [shape: bf16[1376,128], index: 3, kind: output, shape index: {}]  }
   0x1 LB: > { %s1950_s13 = sadd.s32 4294967295, %s2686_s12   ;;  %p1954_p0 = scmp.ge.s32.totalorder %s2686_s12, 1  ;;  %s2686_s12 = sphi %s2709_s12, %s13_s12  }
   0x2   : > { %p139_p1 = scmp.lt.s32.totalorder %s2686_s12, 3 }
   0x4   : > { %p140_p2 = pnand %p1954_p0, %p139_p1 }
   0x5   : > { %s164_s16 = smul.u32 (!%p140_p2), 86, %s1950_s13 }
   0x6   : > { %143 = sbr.rel (%p140_p2) target bundleno = 449 (0x1c1), region = 32 }
   0x7   : > { %p165_p3 = scmp.lt.s32.totalorder (!%p140_p2), %s164_s16, 171 }
   0xb   : > { %v2534_v0 = vld [vmem:[%s3040_s1 + $0x38] sm:$0xff]   ;;  %v2688_v1 = vmov 0   ;;  %v2535_v2 = vld [vmem:[%s3040_s1 + $0x30] sm:$0xff]   ;;  %v2536_v3 = vld [vmem:[%s3040_s1 + $0x28] sm:$0xff]   ;;  %s3044_s16 = smov (!%p165_p3, %s164_s16), 171 }
   0xc   : > { %829 = vmatprep.subr.bf16.mxu0 %v2688_v1  ;;  %2493 = vmatprep.subr.bf16.mxu1 %v2688_v1  ;;  %v2537_v4 = vld [vmem:[%s3040_s1 + $0x20] sm:$0xff]   ;;  %s2149_s23 = sshll.u32 %s3044_s16, 3  ;;  %v2538_v5 = vld [vmem:[%s3040_s1 + $0x18] sm:$0xff]   ;;  %v2539_v7 = vld [vmem:[%s3040_s1 + $0x10] sm:$0xff]  }
   0xd   : > { %830 = vmatpush1.bf16.msra.mxu0 %v2534_v0  ;;  %2509 = vmatpush1.bf16.msra.mxu1 %v2534_v0  ;;  %s2746_s28 = scalar_lea.vmem %s3039_s0, %s2149_s23  ;;  %v2540_v9 = vld [vmem:[%s3040_s1 + $0x8] sm:$0xff]   ;;  %v2541_v10 = vld [vmem:[%s3040_s1] sm:$0xff]   ;;  %v2542_v11 = vld [vmem:[%s3040_s1 + $0x78] sm:$0xff]  }
   0xe   : > { %831 = vmatprep.subr.bf16.mxu0 %v2688_v1  ;;  %2494 = vmatprep.subr.bf16.mxu1 %v2688_v1  ;;  %v2552_v6 = vld [vmem:[%s2746_s28 + $0x4] ss:$8 sps:$4 sm:$0xff]   ;;  %v2543_v12 = vld [vmem:[%s3040_s1 + $0x70] sm:$0xff]   ;;  %v2546_v15 = vld [vmem:[%s3040_s1 + $0x58] sm:$0xff]  }
   0xf   : > { %v2555_v8 = vld [vmem:[%s2746_s28 + $0x164] ss:$8 sps:$4 sm:$0xff]   ;;  %861 = vmatprep.mubr.bf16.mxu0 %v2552_v6  ;;  %v2547_v16 = vld [vmem:[%s3040_s1 + $0x50] sm:$0xff]   ;;  %v2550_v19 = vld [vmem:[%s2746_s28] ss:$8 sps:$4 sm:$0xff]  }
  0x10   : > { %1037 = vmatprep.mubr.bf16.mxu1 %v2555_v8  ;;  %v2544_v13 = vld [vmem:[%s3040_s1 + $0x68] sm:$0xff]   ;;  %v2545_v14 = vld [vmem:[%s3040_s1 + $0x60] sm:$0xff]   ;;  %v2556_v21 = vld [vmem:[%s2746_s28 + $0x14] ss:$8 sps:$4 sm:$0xff]  }
  0x11   : > { %832 = vmatpush1.bf16.msra.mxu0 %v2535_v2  ;;  %2510 = vmatpush1.bf16.msra.mxu1 %v2535_v2  ;;  %v2548_v17 = vld [vmem:[%s3040_s1 + $0x48] sm:$0xff]   ;;  %v2549_v18 = vld [vmem:[%s3040_s1 + $0x40] sm:$0xff]   ;;  %v2559_v22 = vld [vmem:[%s2746_s28 + $0x174] ss:$8 sps:$4 sm:$0xff]  }
  0x12   : > { %833 = vmatprep.subr.bf16.mxu0 %v2688_v1  ;;  %2495 = vmatprep.subr.bf16.mxu1 %v2688_v1  ;;  %v2553_v20 = vld [vmem:[%s2746_s28 + $0x160] ss:$8 sps:$4 sm:$0xff]   ;;  %v2558_v23 = vld [vmem:[%s2746_s28 + $0x10] ss:$8 sps:$4 sm:$0xff]   ;;  %v2562_v25 = vld [vmem:[%s2746_s28 + $0x24] ss:$8 sps:$4 sm:$0xff]  }
  0x13   : > { %v2561_v24 = vld [vmem:[%s2746_s28 + $0x170] ss:$8 sps:$4 sm:$0xff]   ;;  %v2565_v26 = vld [vmem:[%s2746_s28 + $0x184] ss:$8 sps:$4 sm:$0xff]   ;;  %v2564_v27 = vld [vmem:[%s2746_s28 + $0x20] ss:$8 sps:$4 sm:$0xff]  }
  0x14   : > { %v2567_v28 = vld [vmem:[%s2746_s28 + $0x180] ss:$8 sps:$4 sm:$0xff]   ;;  %v2568_v29 = vld [vmem:[%s2746_s28 + $0x34] ss:$8 sps:$4 sm:$0xff]   ;;  %v2570_v31 = vld [vmem:[%s2746_s28 + $0x30] ss:$8 sps:$4 sm:$0xff]  }
  0x15   : > { %834 = vmatpush1.bf16.msra.mxu0 %v2536_v3  ;;  %2511 = vmatpush1.bf16.msra.mxu1 %v2536_v3  ;;  %v2571_v30 = vld [vmem:[%s2746_s28 + $0x194] ss:$8 sps:$4 sm:$0xff]   ;;  %v2573_v32 = vld [vmem:[%s2746_s28 + $0x190] ss:$8 sps:$4 sm:$0xff]   ;;  %v2574_v33 = vld [vmem:[%s2746_s28 + $0x44] ss:$8 sps:$4 sm:$0xff]  }
  0x16   : > { %835 = vmatprep.subr.bf16.mxu0 %v2688_v1  ;;  %2496 = vmatprep.subr.bf16.mxu1 %v2688_v1  ;;  %v2577_v34 = vld [vmem:[%s2746_s28 + $0x1a4] ss:$8 sps:$4 sm:$0xff]   ;;  %v2576_v35 = vld [vmem:[%s2746_s28 + $0x40] ss:$8 sps:$4 sm:$0xff]   ;;  %v2580_v37 = vld [vmem:[%s2746_s28 + $0x54] ss:$8 sps:$4 sm:$0xff]  }
  0x17   : > { %v2579_v36 = vld [vmem:[%s2746_s28 + $0x1a0] ss:$8 sps:$4 sm:$0xff]   ;;  %v2583_v38 = vld [vmem:[%s2746_s28 + $0x1b4] ss:$8 sps:$4 sm:$0xff]   ;;  %v2582_v39 = vld [vmem:[%s2746_s28 + $0x50] ss:$8 sps:$4 sm:$0xff]  }
  0x18   : > { %v2585_v40 = vld [vmem:[%s2746_s28 + $0x1b0] ss:$8 sps:$4 sm:$0xff]   ;;  %v2586_v41 = vld [vmem:[%s2746_s28 + $0x64] ss:$8 sps:$4 sm:$0xff]   ;;  %v2588_v43 = vld [vmem:[%s2746_s28 + $0x60] ss:$8 sps:$4 sm:$0xff]  }
  0x19   : > { %836 = vmatpush1.bf16.msra.mxu0 %v2537_v4  ;;  %2512 = vmatpush1.bf16.msra.mxu1 %v2537_v4  ;;  %v2589_v42 = vld [vmem:[%s2746_s28 + $0x1c4] ss:$8 sps:$4 sm:$0xff]   ;;  %v2591_v44 = vld [vmem:[%s2746_s28 + $0x1c0] ss:$8 sps:$4 sm:$0xff]   ;;  %v2592_v45 = vld [vmem:[%s2746_s28 + $0x74] ss:$8 sps:$4 sm:$0xff]  }
  0x1a   : > { %837 = vmatprep.subr.bf16.mxu0 %v2688_v1  ;;  %2497 = vmatprep.subr.bf16.mxu1 %v2688_v1  ;;  %v2595_v46 = vld [vmem:[%s2746_s28 + $0x1d4] ss:$8 sps:$4 sm:$0xff]   ;;  %v2594_v47 = vld [vmem:[%s2746_s28 + $0x70] ss:$8 sps:$4 sm:$0xff]   ;;  %v2598_v49 = vld [vmem:[%s2746_s28 + $0x84] ss:$8 sps:$4 sm:$0xff]  }
  0x1b   : > { %v2597_v48 = vld [vmem:[%s2746_s28 + $0x1d0] ss:$8 sps:$4 sm:$0xff]   ;;  %v2601_v50 = vld [vmem:[%s2746_s28 + $0x1e4] ss:$8 sps:$4 sm:$0xff]   ;;  %v2600_v51 = vld [vmem:[%s2746_s28 + $0x80] ss:$8 sps:$4 sm:$0xff]  }
  0x1c   : > { %v2603_v52 = vld [vmem:[%s2746_s28 + $0x1e0] ss:$8 sps:$4 sm:$0xff]   ;;  %v2604_v53 = vld [vmem:[%s2746_s28 + $0x94] ss:$8 sps:$4 sm:$0xff]   ;;  %v2606_v55 = vld [vmem:[%s2746_s28 + $0x90] ss:$8 sps:$4 sm:$0xff]  }
  0x1d   : > { %838 = vmatpush1.bf16.msra.mxu0 %v2538_v5  ;;  %2513 = vmatpush1.bf16.msra.mxu1 %v2538_v5  ;;  %v2607_v54 = vld [vmem:[%s2746_s28 + $0x1f4] ss:$8 sps:$4 sm:$0xff]   ;;  %v2609_v56 = vld [vmem:[%s2746_s28 + $0x1f0] ss:$8 sps:$4 sm:$0xff]   ;;  %v2610_v57 = vld [vmem:[%s2746_s28 + $0xa4] ss:$8 sps:$4 sm:$0xff]  }
  0x1e   : > { %839 = vmatprep.subr.bf16.mxu0 %v2688_v1  ;;  %2498 = vmatprep.subr.bf16.mxu1 %v2688_v1  ;;  %v2613_v58 = vld [vmem:[%s2746_s28 + $0x204] ss:$8 sps:$4 sm:$0xff]   ;;  %v2612_v59 = vld [vmem:[%s2746_s28 + $0xa0] ss:$8 sps:$4 sm:$0xff]   ;;  %v2616_v61 = vld [vmem:[%s2746_s28 + $0xb4] ss:$8 sps:$4 sm:$0xff]  }
  0x1f   : > { %v2615_v60 = vld [vmem:[%s2746_s28 + $0x200] ss:$8 sps:$4 sm:$0xff]   ;;  %v2619_v62 = vld [vmem:[%s2746_s28 + $0x214] ss:$8 sps:$4 sm:$0xff]   ;;  %v2618_v63 = vld [vmem:[%s2746_s28 + $0xb0] ss:$8 sps:$4 sm:$0xff]  }
  0x20   : > { %v2621_v0 = vld [vmem:[%s2746_s28 + $0x210] ss:$8 sps:$4 sm:$0xff]   ;;  %v2625_v2 = vld [vmem:[%s2746_s28 + $0x224] ss:$8 sps:$4 sm:$0xff]   ;;  %v2624_v3 = vld [vmem:[%s2746_s28 + $0xc0] ss:$8 sps:$4 sm:$0xff]  }
  0x21   : > { %840 = vmatpush1.bf16.msra.mxu0 %v2539_v7  ;;  %2514 = vmatpush1.bf16.msra.mxu1 %v2539_v7  ;;  %v2627_v4 = vld [vmem:[%s2746_s28 + $0x220] ss:$8 sps:$4 sm:$0xff]   ;;  %v2628_v5 = vld [vmem:[%s2746_s28 + $0xd4] ss:$8 sps:$4 sm:$0xff]   ;;  %v2630_v7 = vld [vmem:[%s2746_s28 + $0xd0] ss:$8 sps:$4 sm:$0xff]  }
  0x22   : > { %841 = vmatprep.subr.bf16.mxu0 %v2688_v1  ;;  %2499 = vmatprep.subr.bf16.mxu1 %v2688_v1  ;;  %v2631_v6 = vld [vmem:[%s2746_s28 + $0x234] ss:$8 sps:$4 sm:$0xff]   ;;  %v2633_v8 = vld [vmem:[%s2746_s28 + $0x230] ss:$8 sps:$4 sm:$0xff]  }
  0x25   : > { %842 = vmatpush1.bf16.msra.mxu0 %v2540_v9  ;;  %2515 = vmatpush1.bf16.msra.mxu1 %v2540_v9  ;;  %v2634_v9 = vld [vmem:[%s2746_s28 + $0xe4] ss:$8 sps:$4 sm:$0xff]  }
  0x26   : > { %843 = vmatprep.subr.bf16.mxu0 %v2688_v1  ;;  %2500 = vmatprep.subr.bf16.mxu1 %v2688_v1 }
  0x29   : > { %844 = vmatpush1.bf16.msra.mxu0 %v2541_v10  ;;  %2516 = vmatpush1.bf16.msra.mxu1 %v2541_v10  ;;  %v2637_v10 = vld [vmem:[%s2746_s28 + $0x244] ss:$8 sps:$4 sm:$0xff]  }
  0x2a   : > { %845 = vmatprep.subr.bf16.mxu0 %v2688_v1  ;;  %2501 = vmatprep.subr.bf16.mxu1 %v2688_v1 }
  0x2d   : > { %846 = vmatpush2.bf16.msra.mxu0 %v2542_v11  ;;  %2517 = vmatpush2.bf16.msra.mxu1 %v2542_v11  ;;  %v2636_v11 = vld [vmem:[%s2746_s28 + $0xe0] ss:$8 sps:$4 sm:$0xff]  }
  0x2e   : > { %847 = vmatprep.subr.bf16.mxu0 %v2688_v1  ;;  %2502 = vmatprep.subr.bf16.mxu1 %v2688_v1 }
  0x31   : > { %848 = vmatpush2.bf16.msra.mxu0 %v2543_v12  ;;  %2518 = vmatpush2.bf16.msra.mxu1 %v2543_v12  ;;  %v2639_v12 = vld [vmem:[%s2746_s28 + $0x240] ss:$8 sps:$4 sm:$0xff]  }
  0x32   : > { %849 = vmatprep.subr.bf16.mxu0 %v2688_v1  ;;  %2503 = vmatprep.subr.bf16.mxu1 %v2688_v1 }
  0x35   : > { %850 = vmatpush2.bf16.msra.mxu0 %v2544_v13  ;;  %2519 = vmatpush2.bf16.msra.mxu1 %v2544_v13  ;;  %v2640_v13 = vld [vmem:[%s2746_s28 + $0xf4] ss:$8 sps:$4 sm:$0xff]  }
  0x36   : > { %851 = vmatprep.subr.bf16.mxu0 %v2688_v1  ;;  %2504 = vmatprep.subr.bf16.mxu1 %v2688_v1 }
  0x39   : > { %852 = vmatpush2.bf16.msra.mxu0 %v2545_v14  ;;  %2520 = vmatpush2.bf16.msra.mxu1 %v2545_v14  ;;  %v2643_v14 = vld [vmem:[%s2746_s28 + $0x254] ss:$8 sps:$4 sm:$0xff]  }
  0x3a   : > { %853 = vmatprep.subr.bf16.mxu0 %v2688_v1  ;;  %2505 = vmatprep.subr.bf16.mxu1 %v2688_v1 }
  0x3d   : > { %854 = vmatpush2.bf16.msra.mxu0 %v2546_v15  ;;  %2521 = vmatpush2.bf16.msra.mxu1 %v2546_v15  ;;  %v2642_v15 = vld [vmem:[%s2746_s28 + $0xf0] ss:$8 sps:$4 sm:$0xff]  }
  0x3e   : > { %855 = vmatprep.subr.bf16.mxu0 %v2688_v1  ;;  %2506 = vmatprep.subr.bf16.mxu1 %v2688_v1 }
  0x41   : > { %856 = vmatpush2.bf16.msra.mxu0 %v2547_v16  ;;  %2522 = vmatpush2.bf16.msra.mxu1 %v2547_v16  ;;  %v2645_v16 = vld [vmem:[%s2746_s28 + $0x250] ss:$8 sps:$4 sm:$0xff]  }
  0x42   : > { %857 = vmatprep.subr.bf16.mxu0 %v2688_v1  ;;  %2507 = vmatprep.subr.bf16.mxu1 %v2688_v1 }
  0x45   : > { %858 = vmatpush2.bf16.msra.mxu0 %v2548_v17  ;;  %2523 = vmatpush2.bf16.msra.mxu1 %v2548_v17  ;;  %v2646_v17 = vld [vmem:[%s2746_s28 + $0x104] ss:$8 sps:$4 sm:$0xff]  }
  0x46   : > { %859 = vmatprep.subr.bf16.mxu0 %v2688_v1  ;;  %2508 = vmatprep.subr.bf16.mxu1 %v2688_v1  ;;  %v2622_v1 = vld [vmem:[%s2746_s28 + $0xc4] ss:$8 sps:$4 sm:$0xff]  }
  0x49   : > { %860 = vmatpush2.bf16.msra.mxu0 %v2549_v18  ;;  %2524 = vmatpush2.bf16.msra.mxu1 %v2549_v18  ;;  %v2649_v18 = vld [vmem:[%s2746_s28 + $0x264] ss:$8 sps:$4 sm:$0xff]  }
  0x4c   : > { %862 = vmatmul.mubr.bf16.vlgmr.msra.gmra.mxu0 %v2550_v19  ;;  %1038 = vmatmul.mubr.bf16.vlgmr.msra.gmra.mxu1 %v2553_v20  ;;  %v2648_v19 = vld [vmem:[%s2746_s28 + $0x100] ss:$8 sps:$4 sm:$0xff]  }
  0x4d   : > { %869 = vmatprep.mubr.bf16.mxu0 %v2556_v21  ;;  %1045 = vmatprep.mubr.bf16.mxu1 %v2559_v22  ;;  %v2651_v20 = vld [vmem:[%s2746_s28 + $0x260] ss:$8 sps:$4 sm:$0xff]   ;;  %v2652_v21 = vld [vmem:[%s2746_s28 + $0x114] ss:$8 sps:$4 sm:$0xff]  }
  0x4e   : > { %v2655_v22 = vld [vmem:[%s2746_s28 + $0x274] ss:$8 sps:$4 sm:$0xff]  }
  0x54   : > { %870 = vmatmul.mubr.bf16.gmra.mxu0 %v2558_v23  ;;  %1046 = vmatmul.mubr.bf16.gmra.mxu1 %v2561_v24  ;;  %v2654_v23 = vld [vmem:[%s2746_s28 + $0x110] ss:$8 sps:$4 sm:$0xff]  }
  0x55   : > { %877 = vmatprep.mubr.bf16.mxu0 %v2562_v25  ;;  %1053 = vmatprep.mubr.bf16.mxu1 %v2565_v26  ;;  %v2657_v24 = vld [vmem:[%s2746_s28 + $0x270] ss:$8 sps:$4 sm:$0xff]   ;;  %v2658_v25 = vld [vmem:[%s2746_s28 + $0x124] ss:$8 sps:$4 sm:$0xff]  }
  0x56   : > { %v2661_v26 = vld [vmem:[%s2746_s28 + $0x284] ss:$8 sps:$4 sm:$0xff]  }
  0x5c   : > { %878 = vmatmul.mubr.bf16.gmra.mxu0 %v2564_v27  ;;  %1054 = vmatmul.mubr.bf16.gmra.mxu1 %v2567_v28  ;;  %v2660_v27 = vld [vmem:[%s2746_s28 + $0x120] ss:$8 sps:$4 sm:$0xff]  }
  0x5d   : > { %885 = vmatprep.mubr.bf16.mxu0 %v2568_v29  ;;  %1061 = vmatprep.mubr.bf16.mxu1 %v2571_v30  ;;  %v2663_v28 = vld [vmem:[%s2746_s28 + $0x280] ss:$8 sps:$4 sm:$0xff]   ;;  %v2664_v29 = vld [vmem:[%s2746_s28 + $0x134] ss:$8 sps:$4 sm:$0xff]  }
  0x5e   : > { %v2667_v30 = vld [vmem:[%s2746_s28 + $0x294] ss:$8 sps:$4 sm:$0xff]  }
  0x64   : > { %886 = vmatmul.mubr.bf16.gmra.mxu0 %v2570_v31  ;;  %1062 = vmatmul.mubr.bf16.gmra.mxu1 %v2573_v32  ;;  %v2666_v31 = vld [vmem:[%s2746_s28 + $0x130] ss:$8 sps:$4 sm:$0xff]  }
  0x65   : > { %893 = vmatprep.mubr.bf16.mxu0 %v2574_v33  ;;  %1069 = vmatprep.mubr.bf16.mxu1 %v2577_v34  ;;  %v2669_v32 = vld [vmem:[%s2746_s28 + $0x290] ss:$8 sps:$4 sm:$0xff]   ;;  %v2670_v33 = vld [vmem:[%s2746_s28 + $0x144] ss:$8 sps:$4 sm:$0xff]  }
  0x66   : > { %v2673_v34 = vld [vmem:[%s2746_s28 + $0x2a4] ss:$8 sps:$4 sm:$0xff]  }
  0x6c   : > { %894 = vmatmul.mubr.bf16.gmra.mxu0 %v2576_v35  ;;  %1070 = vmatmul.mubr.bf16.gmra.mxu1 %v2579_v36  ;;  %v2672_v35 = vld [vmem:[%s2746_s28 + $0x140] ss:$8 sps:$4 sm:$0xff]  }
  0x6d   : > { %901 = vmatprep.mubr.bf16.mxu0 %v2580_v37  ;;  %1077 = vmatprep.mubr.bf16.mxu1 %v2583_v38  ;;  %v2675_v36 = vld [vmem:[%s2746_s28 + $0x2a0] ss:$8 sps:$4 sm:$0xff]   ;;  %v2676_v37 = vld [vmem:[%s2746_s28 + $0x154] ss:$8 sps:$4 sm:$0xff]   ;;  %v2678_v38 = vld [vmem:[%s2746_s28 + $0x150] ss:$8 sps:$4 sm:$0xff]  }
  0x6e   : > { %s1957_s28 = sshll.u32 %s3044_s16, 2 }
  0x6f   : > { %s2904_s4 = scalar_lea.vmem %s3042_s3, %s1957_s28 }
  0x74   : > { %902 = vmatmul.mubr.bf16.gmra.mxu0 %v2582_v39  ;;  %1078 = vmatmul.mubr.bf16.gmra.mxu1 %v2585_v40  ;;  %v2894_v39 = vld [vmem:[%s3041_s2] ss:$0 sm:$0xff] }
  0x75   : > { %909 = vmatprep.mubr.bf16.mxu0 %v2586_v41  ;;  %1085 = vmatprep.mubr.bf16.mxu1 %v2589_v42 }
  0x7c   : > { %910 = vmatmul.mubr.bf16.gmra.mxu0 %v2588_v43  ;;  %1086 = vmatmul.mubr.bf16.gmra.mxu1 %v2591_v44 }
  0x7d   : > { %917 = vmatprep.mubr.bf16.mxu0 %v2592_v45  ;;  %1093 = vmatprep.mubr.bf16.mxu1 %v2595_v46 }
  0x84   : > { %918 = vmatmul.mubr.bf16.gmra.mxu0 %v2594_v47  ;;  %1094 = vmatmul.mubr.bf16.gmra.mxu1 %v2597_v48 }
  0x85   : > { %925 = vmatprep.mubr.bf16.mxu0 %v2598_v49  ;;  %1101 = vmatprep.mubr.bf16.mxu1 %v2601_v50 }
  0x8c   : > { %926 = vmatmul.mubr.bf16.gmra.mxu0 %v2600_v51  ;;  %1102 = vmatmul.mubr.bf16.gmra.mxu1 %v2603_v52 }
  0x8d   : > { %933 = vmatprep.mubr.bf16.mxu0 %v2604_v53  ;;  %1109 = vmatprep.mubr.bf16.mxu1 %v2607_v54 }
  0x94   : > { %934 = vmatmul.mubr.bf16.gmra.mxu0 %v2606_v55  ;;  %1110 = vmatmul.mubr.bf16.gmra.mxu1 %v2609_v56 }
  0x95   : > { %941 = vmatprep.mubr.bf16.mxu0 %v2610_v57  ;;  %1117 = vmatprep.mubr.bf16.mxu1 %v2613_v58 }
  0x9c   : > { %942 = vmatmul.mubr.bf16.gmra.mxu0 %v2612_v59  ;;  %1118 = vmatmul.mubr.bf16.gmra.mxu1 %v2615_v60 }
  0x9d   : > { %949 = vmatprep.mubr.bf16.mxu0 %v2616_v61  ;;  %1125 = vmatprep.mubr.bf16.mxu1 %v2619_v62 }
  0xa4   : > { %950 = vmatmul.mubr.bf16.gmra.mxu0 %v2618_v63  ;;  %1126 = vmatmul.mubr.bf16.gmra.mxu1 %v2621_v0 }
  0xa5   : > { %957 = vmatprep.mubr.bf16.mxu0 %v2622_v1  ;;  %1133 = vmatprep.mubr.bf16.mxu1 %v2625_v2 }
  0xac   : > { %958 = vmatmul.mubr.bf16.gmra.mxu0 %v2624_v3  ;;  %1134 = vmatmul.mubr.bf16.gmra.mxu1 %v2627_v4 }
  0xad   : > { %965 = vmatprep.mubr.bf16.mxu0 %v2628_v5  ;;  %1141 = vmatprep.mubr.bf16.mxu1 %v2631_v6 }
  0xb4   : > { %966 = vmatmul.mubr.bf16.gmra.mxu0 %v2630_v7  ;;  %1142 = vmatmul.mubr.bf16.gmra.mxu1 %v2633_v8 }
  0xb5   : > { %973 = vmatprep.mubr.bf16.mxu0 %v2634_v9  ;;  %1149 = vmatprep.mubr.bf16.mxu1 %v2637_v10 }
  0xbc   : > { %974 = vmatmul.mubr.bf16.gmra.mxu0 %v2636_v11  ;;  %1150 = vmatmul.mubr.bf16.gmra.mxu1 %v2639_v12 }
  0xbd   : > { %981 = vmatprep.mubr.bf16.mxu0 %v2640_v13  ;;  %1157 = vmatprep.mubr.bf16.mxu1 %v2643_v14 }
  0xc4   : > { %982 = vmatmul.mubr.bf16.gmra.mxu0 %v2642_v15  ;;  %1158 = vmatmul.mubr.bf16.gmra.mxu1 %v2645_v16 }
  0xc5   : > { %989 = vmatprep.mubr.bf16.mxu0 %v2646_v17  ;;  %1165 = vmatprep.mubr.bf16.mxu1 %v2649_v18 }
  0xcc   : > { %990 = vmatmul.mubr.bf16.gmra.mxu0 %v2648_v19  ;;  %1166 = vmatmul.mubr.bf16.gmra.mxu1 %v2651_v20 }
  0xcd   : > { %997 = vmatprep.mubr.bf16.mxu0 %v2652_v21  ;;  %1173 = vmatprep.mubr.bf16.mxu1 %v2655_v22 }
  0xd4   : > { %998 = vmatmul.mubr.bf16.gmra.mxu0 %v2654_v23  ;;  %1174 = vmatmul.mubr.bf16.gmra.mxu1 %v2657_v24 }
  0xd5   : > { %1005 = vmatprep.mubr.bf16.mxu0 %v2658_v25  ;;  %1181 = vmatprep.mubr.bf16.mxu1 %v2661_v26 }
  0xdc   : > { %1006 = vmatmul.mubr.bf16.gmra.mxu0 %v2660_v27  ;;  %1182 = vmatmul.mubr.bf16.gmra.mxu1 %v2663_v28 }
  0xdd   : > { %1013 = vmatprep.mubr.bf16.mxu0 %v2664_v29  ;;  %1189 = vmatprep.mubr.bf16.mxu1 %v2667_v30 }
  0xe4   : > { %1014 = vmatmul.mubr.bf16.gmra.mxu0 %v2666_v31  ;;  %1190 = vmatmul.mubr.bf16.gmra.mxu1 %v2669_v32 }
  0xe5   : > { %1021 = vmatprep.mubr.bf16.mxu0 %v2670_v33  ;;  %1197 = vmatprep.mubr.bf16.mxu1 %v2673_v34 }
  0xec   : > { %1022 = vmatmul.mubr.bf16.gmra.mxu0 %v2672_v35  ;;  %1198 = vmatmul.mubr.bf16.gmra.mxu1 %v2675_v36 }
  0xed   : > { %1029 = vmatprep.mubr.bf16.mxu0 %v2676_v37 }
  0xf4   : > { %1030 = vmatmul.mubr.bf16.gmra.mxu0 %v2678_v38 }
 0x10c   : > { %v863_v40 = vpop.f32.mrf.mxu0  ;;  %v1039_v41 = vpop.f32.mrf.mxu1 }
 0x10d   : > { %v864_v42 = vadd.f32 %v2894_v39, %v863_v40  ;;  %v1040_v43 = vadd.f32 %v2894_v39, %v1039_v41 }
 0x10e   : > { %v865_v44 = vpop.f32.mrf.mxu0  ;;  %v1041_v45 = vpop.f32.mrf.mxu1 }
 0x10f   : > { %vm1250_vm0 = vcmp.gt.f32.partialorder %v1040_v43, 0.0  ;;  %v1336_v46 = vmul.f32 0.01, %v1040_v43  ;;  %v1292_v47 = vmul.f32 0.01, %v864_v42  ;;  %vm1206_vm1 = vcmp.gt.f32.partialorder %v864_v42, 0.0 }
 0x110   : > { %v866_v48 = vpop.f32.mrf.mxu0  ;;  %v1042_v49 = vpop.f32.mrf.mxu1 }
 0x111   : > { %v867_v50 = vadd.f32 %v2894_v39, %v866_v48  ;;  %v1043_v51 = vadd.f32 %v2894_v39, %v1042_v49  ;;  %v1422_v52 = vsel %vm1250_vm0, %v1040_v43, %v1336_v46  ;;  %v1378_v57 = vsel %vm1206_vm1, %v864_v42, %v1292_v47 }
 0x112   : > { %v868_v53 = vpop.f32.mrf.mxu0  ;;  %v1044_v54 = vpop.f32.mrf.mxu1 }
 0x113   : > { %vm1207_vm2 = vcmp.gt.f32.partialorder %v867_v50, 0.0  ;;  %v1293_v55 = vmul.f32 0.01, %v867_v50  ;;  %vm1251_vm3 = vcmp.gt.f32.partialorder %v1043_v51, 0.0  ;;  %v1337_v56 = vmul.f32 0.01, %v1043_v51 }
 0x114   : > { %v871_v58 = vpop.f32.mrf.mxu0  ;;  %v1047_v59 = vpop.f32.mrf.mxu1 }
 0x115   : > { %v1379_v60 = vsel %vm1207_vm2, %v867_v50, %v1293_v55  ;;  %v1423_v61 = vsel %vm1251_vm3, %v1043_v51, %v1337_v56  ;;  %v872_v62 = vadd.f32 %v2894_v39, %v871_v58  ;;  %v1048_v63 = vadd.f32 %v2894_v39, %v1047_v59 }
 0x116   : > { %v2239_v0 = vpack.c.bf16 %v1379_v60, %v1378_v57  ;;  %v2349_v1 = vpack.c.bf16 %v1423_v61, %v1422_v52  ;;  %v873_v2 = vpop.f32.mrf.mxu0  ;;  %v1049_v3 = vpop.f32.mrf.mxu1 }
 0x117   : > { %vm1252_vm4 = vcmp.gt.f32.partialorder %v1048_v63, 0.0  ;;  %v1338_v4 = vmul.f32 0.01, %v1048_v63  ;;  %v1294_v5 = vmul.f32 0.01, %v872_v62  ;;  %vm1208_vm5 = vcmp.gt.f32.partialorder %v872_v62, 0.0 }
 0x118   : > { %2240 = vst [vmem:[%s2904_s4] sm:$0xff] %v2239_v0   ;;  %2472 = vst [vmem:[%s2904_s4 + $0xb0] sm:$0xff] %v2349_v1   ;;  %v874_v6 = vpop.f32.mrf.mxu0  ;;  %v1050_v7 = vpop.f32.mrf.mxu1 }
 0x119   : > { %v875_v8 = vadd.f32 %v2894_v39, %v874_v6  ;;  %v1051_v9 = vadd.f32 %v2894_v39, %v1050_v7  ;;  %v1424_v10 = vsel %vm1252_vm4, %v1048_v63, %v1338_v4  ;;  %v1380_v15 = vsel %vm1208_vm5, %v872_v62, %v1294_v5 }
 0x11a   : > { %v876_v11 = vpop.f32.mrf.mxu0  ;;  %v1052_v12 = vpop.f32.mrf.mxu1 }
 0x11b   : > { %vm1209_vm6 = vcmp.gt.f32.partialorder %v875_v8, 0.0  ;;  %v1295_v13 = vmul.f32 0.01, %v875_v8  ;;  %vm1253_vm7 = vcmp.gt.f32.partialorder %v1051_v9, 0.0  ;;  %v1339_v14 = vmul.f32 0.01, %v1051_v9 }
 0x11c   : > { %v879_v16 = vpop.f32.mrf.mxu0  ;;  %v1055_v17 = vpop.f32.mrf.mxu1 }
 0x11d   : > { %v1381_v18 = vsel %vm1209_vm6, %v875_v8, %v1295_v13  ;;  %v1425_v19 = vsel %vm1253_vm7, %v1051_v9, %v1339_v14  ;;  %v880_v20 = vadd.f32 %v2894_v39, %v879_v16  ;;  %v1056_v21 = vadd.f32 %v2894_v39, %v1055_v17 }
 0x11e   : > { %v2244_v22 = vpack.c.bf16 %v1381_v18, %v1380_v15  ;;  %v2354_v23 = vpack.c.bf16 %v1425_v19, %v1424_v10  ;;  %v881_v24 = vpop.f32.mrf.mxu0  ;;  %v1057_v25 = vpop.f32.mrf.mxu1 }
 0x11f   : > { %vm1254_vm8 = vcmp.gt.f32.partialorder %v1056_v21, 0.0  ;;  %v1340_v26 = vmul.f32 0.01, %v1056_v21  ;;  %v1296_v27 = vmul.f32 0.01, %v880_v20  ;;  %vm1210_vm9 = vcmp.gt.f32.partialorder %v880_v20, 0.0 }
 0x120   : > { %2451 = vst [vmem:[%s2904_s4 + $0x8] sm:$0xff] %v2244_v22   ;;  %2473 = vst [vmem:[%s2904_s4 + $0xb8] sm:$0xff] %v2354_v23   ;;  %v882_v28 = vpop.f32.mrf.mxu0  ;;  %v1058_v29 = vpop.f32.mrf.mxu1 }
 0x121   : > { %v883_v30 = vadd.f32 %v2894_v39, %v882_v28  ;;  %v1059_v31 = vadd.f32 %v2894_v39, %v1058_v29  ;;  %v1426_v32 = vsel %vm1254_vm8, %v1056_v21, %v1340_v26  ;;  %v1382_v37 = vsel %vm1210_vm9, %v880_v20, %v1296_v27 }
 0x122   : > { %v884_v33 = vpop.f32.mrf.mxu0  ;;  %v1060_v34 = vpop.f32.mrf.mxu1 }
 0x123   : > { %vm1211_vm10 = vcmp.gt.f32.partialorder %v883_v30, 0.0  ;;  %v1297_v35 = vmul.f32 0.01, %v883_v30  ;;  %vm1255_vm11 = vcmp.gt.f32.partialorder %v1059_v31, 0.0  ;;  %v1341_v36 = vmul.f32 0.01, %v1059_v31 }
 0x124   : > { %v887_v38 = vpop.f32.mrf.mxu0  ;;  %v1063_v40 = vpop.f32.mrf.mxu1 }
 0x125   : > { %v1383_v41 = vsel %vm1211_vm10, %v883_v30, %v1297_v35  ;;  %v1427_v42 = vsel %vm1255_vm11, %v1059_v31, %v1341_v36  ;;  %v888_v43 = vadd.f32 %v2894_v39, %v887_v38  ;;  %v1064_v44 = vadd.f32 %v2894_v39, %v1063_v40 }
 0x126   : > { %v2249_v45 = vpack.c.bf16 %v1383_v41, %v1382_v37  ;;  %v2359_v46 = vpack.c.bf16 %v1427_v42, %v1426_v32  ;;  %v889_v47 = vpop.f32.mrf.mxu0  ;;  %v1065_v48 = vpop.f32.mrf.mxu1 }
 0x127   : > { %vm1256_vm12 = vcmp.gt.f32.partialorder %v1064_v44, 0.0  ;;  %v1342_v49 = vmul.f32 0.01, %v1064_v44  ;;  %v1298_v50 = vmul.f32 0.01, %v888_v43  ;;  %vm1212_vm13 = vcmp.gt.f32.partialorder %v888_v43, 0.0 }
 0x128   : > { %2452 = vst [vmem:[%s2904_s4 + $0x10] sm:$0xff] %v2249_v45   ;;  %2474 = vst [vmem:[%s2904_s4 + $0xc0] sm:$0xff] %v2359_v46   ;;  %v890_v51 = vpop.f32.mrf.mxu0  ;;  %v1066_v52 = vpop.f32.mrf.mxu1 }
 0x129   : > { %v891_v53 = vadd.f32 %v2894_v39, %v890_v51  ;;  %v1067_v54 = vadd.f32 %v2894_v39, %v1066_v52  ;;  %v1428_v55 = vsel %vm1256_vm12, %v1064_v44, %v1342_v49  ;;  %v1384_v60 = vsel %vm1212_vm13, %v888_v43, %v1298_v50 }
 0x12a   : > { %v892_v56 = vpop.f32.mrf.mxu0  ;;  %v1068_v57 = vpop.f32.mrf.mxu1 }
 0x12b   : > { %vm1213_vm14 = vcmp.gt.f32.partialorder %v891_v53, 0.0  ;;  %v1299_v58 = vmul.f32 0.01, %v891_v53  ;;  %vm1257_vm15 = vcmp.gt.f32.partialorder %v1067_v54, 0.0  ;;  %v1343_v59 = vmul.f32 0.01, %v1067_v54 }
 0x12c   : > { %v895_v61 = vpop.f32.mrf.mxu0  ;;  %v1071_v62 = vpop.f32.mrf.mxu1 }
 0x12d   : > { %v1385_v63 = vsel %vm1213_vm14, %v891_v53, %v1299_v58  ;;  %v1429_v0 = vsel %vm1257_vm15, %v1067_v54, %v1343_v59  ;;  %v896_v1 = vadd.f32 %v2894_v39, %v895_v61  ;;  %v1072_v2 = vadd.f32 %v2894_v39, %v1071_v62 }
 0x12e   : > { %v2254_v3 = vpack.c.bf16 %v1385_v63, %v1384_v60  ;;  %v2364_v4 = vpack.c.bf16 %v1429_v0, %v1428_v55  ;;  %v897_v5 = vpop.f32.mrf.mxu0  ;;  %v1073_v6 = vpop.f32.mrf.mxu1 }
 0x12f   : > { %vm1258_vm0 = vcmp.gt.f32.partialorder %v1072_v2, 0.0  ;;  %v1344_v7 = vmul.f32 0.01, %v1072_v2  ;;  %v1300_v8 = vmul.f32 0.01, %v896_v1  ;;  %vm1214_vm1 = vcmp.gt.f32.partialorder %v896_v1, 0.0 }
 0x130   : > { %2453 = vst [vmem:[%s2904_s4 + $0x18] sm:$0xff] %v2254_v3   ;;  %2475 = vst [vmem:[%s2904_s4 + $0xc8] sm:$0xff] %v2364_v4   ;;  %v898_v9 = vpop.f32.mrf.mxu0  ;;  %v1074_v10 = vpop.f32.mrf.mxu1 }
 0x131   : > { %v899_v11 = vadd.f32 %v2894_v39, %v898_v9  ;;  %v1075_v12 = vadd.f32 %v2894_v39, %v1074_v10  ;;  %v1430_v13 = vsel %vm1258_vm0, %v1072_v2, %v1344_v7  ;;  %v1386_v18 = vsel %vm1214_vm1, %v896_v1, %v1300_v8 }
 0x132   : > { %v900_v14 = vpop.f32.mrf.mxu0  ;;  %v1076_v15 = vpop.f32.mrf.mxu1 }
 0x133   : > { %vm1215_vm2 = vcmp.gt.f32.partialorder %v899_v11, 0.0  ;;  %v1301_v16 = vmul.f32 0.01, %v899_v11  ;;  %vm1259_vm3 = vcmp.gt.f32.partialorder %v1075_v12, 0.0  ;;  %v1345_v17 = vmul.f32 0.01, %v1075_v12 }
 0x134   : > { %v903_v19 = vpop.f32.mrf.mxu0  ;;  %v1079_v20 = vpop.f32.mrf.mxu1 }
 0x135   : > { %v1387_v21 = vsel %vm1215_vm2, %v899_v11, %v1301_v16  ;;  %v1431_v22 = vsel %vm1259_vm3, %v1075_v12, %v1345_v17  ;;  %v904_v23 = vadd.f32 %v2894_v39, %v903_v19  ;;  %v1080_v24 = vadd.f32 %v2894_v39, %v1079_v20 }
 0x136   : > { %v2259_v25 = vpack.c.bf16 %v1387_v21, %v1386_v18  ;;  %v2369_v26 = vpack.c.bf16 %v1431_v22, %v1430_v13  ;;  %v905_v27 = vpop.f32.mrf.mxu0  ;;  %v1081_v28 = vpop.f32.mrf.mxu1 }
 0x137   : > { %vm1260_vm4 = vcmp.gt.f32.partialorder %v1080_v24, 0.0  ;;  %v1346_v29 = vmul.f32 0.01, %v1080_v24  ;;  %v1302_v30 = vmul.f32 0.01, %v904_v23  ;;  %vm1216_vm5 = vcmp.gt.f32.partialorder %v904_v23, 0.0 }
 0x138   : > { %2454 = vst [vmem:[%s2904_s4 + $0x20] sm:$0xff] %v2259_v25   ;;  %2476 = vst [vmem:[%s2904_s4 + $0xd0] sm:$0xff] %v2369_v26   ;;  %v906_v31 = vpop.f32.mrf.mxu0  ;;  %v1082_v32 = vpop.f32.mrf.mxu1 }
 0x139   : > { %v907_v33 = vadd.f32 %v2894_v39, %v906_v31  ;;  %v1083_v34 = vadd.f32 %v2894_v39, %v1082_v32  ;;  %v1432_v35 = vsel %vm1260_vm4, %v1080_v24, %v1346_v29  ;;  %v1388_v41 = vsel %vm1216_vm5, %v904_v23, %v1302_v30 }
 0x13a   : > { %v908_v36 = vpop.f32.mrf.mxu0  ;;  %v1084_v37 = vpop.f32.mrf.mxu1 }
 0x13b   : > { %vm1217_vm6 = vcmp.gt.f32.partialorder %v907_v33, 0.0  ;;  %v1303_v38 = vmul.f32 0.01, %v907_v33  ;;  %vm1261_vm7 = vcmp.gt.f32.partialorder %v1083_v34, 0.0  ;;  %v1347_v40 = vmul.f32 0.01, %v1083_v34 }
 0x13c   : > { %v911_v42 = vpop.f32.mrf.mxu0  ;;  %v1087_v43 = vpop.f32.mrf.mxu1 }
 0x13d   : > { %v1389_v44 = vsel %vm1217_vm6, %v907_v33, %v1303_v38  ;;  %v1433_v45 = vsel %vm1261_vm7, %v1083_v34, %v1347_v40  ;;  %v912_v46 = vadd.f32 %v2894_v39, %v911_v42  ;;  %v1088_v47 = vadd.f32 %v2894_v39, %v1087_v43 }
 0x13e   : > { %v2264_v48 = vpack.c.bf16 %v1389_v44, %v1388_v41  ;;  %v2374_v49 = vpack.c.bf16 %v1433_v45, %v1432_v35  ;;  %v913_v50 = vpop.f32.mrf.mxu0  ;;  %v1089_v51 = vpop.f32.mrf.mxu1 }
 0x13f   : > { %vm1262_vm8 = vcmp.gt.f32.partialorder %v1088_v47, 0.0  ;;  %v1348_v52 = vmul.f32 0.01, %v1088_v47  ;;  %v1304_v53 = vmul.f32 0.01, %v912_v46  ;;  %vm1218_vm9 = vcmp.gt.f32.partialorder %v912_v46, 0.0 }
 0x140   : > { %2455 = vst [vmem:[%s2904_s4 + $0x28] sm:$0xff] %v2264_v48   ;;  %2477 = vst [vmem:[%s2904_s4 + $0xd8] sm:$0xff] %v2374_v49   ;;  %v914_v54 = vpop.f32.mrf.mxu0  ;;  %v1090_v55 = vpop.f32.mrf.mxu1 }
 0x141   : > { %v915_v56 = vadd.f32 %v2894_v39, %v914_v54  ;;  %v1091_v57 = vadd.f32 %v2894_v39, %v1090_v55  ;;  %v1434_v58 = vsel %vm1262_vm8, %v1088_v47, %v1348_v52  ;;  %v1390_v63 = vsel %vm1218_vm9, %v912_v46, %v1304_v53 }
 0x142   : > { %v916_v59 = vpop.f32.mrf.mxu0  ;;  %v1092_v60 = vpop.f32.mrf.mxu1 }
 0x143   : > { %vm1219_vm10 = vcmp.gt.f32.partialorder %v915_v56, 0.0  ;;  %v1305_v61 = vmul.f32 0.01, %v915_v56  ;;  %vm1263_vm11 = vcmp.gt.f32.partialorder %v1091_v57, 0.0  ;;  %v1349_v62 = vmul.f32 0.01, %v1091_v57 }
 0x144   : > { %v919_v0 = vpop.f32.mrf.mxu0  ;;  %v1095_v1 = vpop.f32.mrf.mxu1 }
 0x145   : > { %v1391_v2 = vsel %vm1219_vm10, %v915_v56, %v1305_v61  ;;  %v1435_v3 = vsel %vm1263_vm11, %v1091_v57, %v1349_v62  ;;  %v920_v4 = vadd.f32 %v2894_v39, %v919_v0  ;;  %v1096_v5 = vadd.f32 %v2894_v39, %v1095_v1 }
 0x146   : > { %v2269_v6 = vpack.c.bf16 %v1391_v2, %v1390_v63  ;;  %v2379_v7 = vpack.c.bf16 %v1435_v3, %v1434_v58  ;;  %v921_v8 = vpop.f32.mrf.mxu0  ;;  %v1097_v9 = vpop.f32.mrf.mxu1 }
 0x147   : > { %vm1264_vm12 = vcmp.gt.f32.partialorder %v1096_v5, 0.0  ;;  %v1350_v10 = vmul.f32 0.01, %v1096_v5  ;;  %v1306_v11 = vmul.f32 0.01, %v920_v4  ;;  %vm1220_vm13 = vcmp.gt.f32.partialorder %v920_v4, 0.0 }
 0x148   : > { %2456 = vst [vmem:[%s2904_s4 + $0x30] sm:$0xff] %v2269_v6   ;;  %2478 = vst [vmem:[%s2904_s4 + $0xe0] sm:$0xff] %v2379_v7   ;;  %v922_v12 = vpop.f32.mrf.mxu0  ;;  %v1098_v13 = vpop.f32.mrf.mxu1 }
 0x149   : > { %v923_v14 = vadd.f32 %v2894_v39, %v922_v12  ;;  %v1099_v15 = vadd.f32 %v2894_v39, %v1098_v13  ;;  %v1436_v16 = vsel %vm1264_vm12, %v1096_v5, %v1350_v10  ;;  %v1392_v21 = vsel %vm1220_vm13, %v920_v4, %v1306_v11 }
 0x14a   : > { %v924_v17 = vpop.f32.mrf.mxu0  ;;  %v1100_v18 = vpop.f32.mrf.mxu1 }
 0x14b   : > { %vm1221_vm14 = vcmp.gt.f32.partialorder %v923_v14, 0.0  ;;  %v1307_v19 = vmul.f32 0.01, %v923_v14  ;;  %vm1265_vm15 = vcmp.gt.f32.partialorder %v1099_v15, 0.0  ;;  %v1351_v20 = vmul.f32 0.01, %v1099_v15 }
 0x14c   : > { %v927_v22 = vpop.f32.mrf.mxu0  ;;  %v1103_v23 = vpop.f32.mrf.mxu1 }
 0x14d   : > { %v1393_v24 = vsel %vm1221_vm14, %v923_v14, %v1307_v19  ;;  %v1437_v25 = vsel %vm1265_vm15, %v1099_v15, %v1351_v20  ;;  %v928_v26 = vadd.f32 %v2894_v39, %v927_v22  ;;  %v1104_v27 = vadd.f32 %v2894_v39, %v1103_v23 }
 0x14e   : > { %v2274_v28 = vpack.c.bf16 %v1393_v24, %v1392_v21  ;;  %v2384_v29 = vpack.c.bf16 %v1437_v25, %v1436_v16  ;;  %v929_v30 = vpop.f32.mrf.mxu0  ;;  %v1105_v31 = vpop.f32.mrf.mxu1 }
 0x14f   : > { %vm1266_vm0 = vcmp.gt.f32.partialorder %v1104_v27, 0.0  ;;  %v1352_v32 = vmul.f32 0.01, %v1104_v27  ;;  %v1308_v33 = vmul.f32 0.01, %v928_v26  ;;  %vm1222_vm1 = vcmp.gt.f32.partialorder %v928_v26, 0.0 }
 0x150   : > { %2457 = vst [vmem:[%s2904_s4 + $0x38] sm:$0xff] %v2274_v28   ;;  %2479 = vst [vmem:[%s2904_s4 + $0xe8] sm:$0xff] %v2384_v29   ;;  %v930_v34 = vpop.f32.mrf.mxu0  ;;  %v1106_v35 = vpop.f32.mrf.mxu1 }
 0x151   : > { %v931_v36 = vadd.f32 %v2894_v39, %v930_v34  ;;  %v1107_v37 = vadd.f32 %v2894_v39, %v1106_v35  ;;  %v1438_v38 = vsel %vm1266_vm0, %v1104_v27, %v1352_v32  ;;  %v1394_v44 = vsel %vm1222_vm1, %v928_v26, %v1308_v33 }
 0x152   : > { %v932_v40 = vpop.f32.mrf.mxu0  ;;  %v1108_v41 = vpop.f32.mrf.mxu1 }
 0x153   : > { %vm1223_vm2 = vcmp.gt.f32.partialorder %v931_v36, 0.0  ;;  %v1309_v42 = vmul.f32 0.01, %v931_v36  ;;  %vm1267_vm3 = vcmp.gt.f32.partialorder %v1107_v37, 0.0  ;;  %v1353_v43 = vmul.f32 0.01, %v1107_v37 }
 0x154   : > { %v935_v45 = vpop.f32.mrf.mxu0  ;;  %v1111_v46 = vpop.f32.mrf.mxu1 }
 0x155   : > { %v1395_v47 = vsel %vm1223_vm2, %v931_v36, %v1309_v42  ;;  %v1439_v48 = vsel %vm1267_vm3, %v1107_v37, %v1353_v43  ;;  %v936_v49 = vadd.f32 %v2894_v39, %v935_v45  ;;  %v1112_v50 = vadd.f32 %v2894_v39, %v1111_v46 }
 0x156   : > { %v2279_v51 = vpack.c.bf16 %v1395_v47, %v1394_v44  ;;  %v2389_v52 = vpack.c.bf16 %v1439_v48, %v1438_v38  ;;  %v937_v53 = vpop.f32.mrf.mxu0  ;;  %v1113_v54 = vpop.f32.mrf.mxu1 }
 0x157   : > { %vm1268_vm4 = vcmp.gt.f32.partialorder %v1112_v50, 0.0  ;;  %v1354_v55 = vmul.f32 0.01, %v1112_v50  ;;  %v1310_v56 = vmul.f32 0.01, %v936_v49  ;;  %vm1224_vm5 = vcmp.gt.f32.partialorder %v936_v49, 0.0 }
 0x158   : > { %2458 = vst [vmem:[%s2904_s4 + $0x40] sm:$0xff] %v2279_v51   ;;  %2480 = vst [vmem:[%s2904_s4 + $0xf0] sm:$0xff] %v2389_v52   ;;  %v938_v57 = vpop.f32.mrf.mxu0  ;;  %v1114_v58 = vpop.f32.mrf.mxu1 }
 0x159   : > { %v939_v59 = vadd.f32 %v2894_v39, %v938_v57  ;;  %v1115_v60 = vadd.f32 %v2894_v39, %v1114_v58  ;;  %v1440_v61 = vsel %vm1268_vm4, %v1112_v50, %v1354_v55  ;;  %v1396_v2 = vsel %vm1224_vm5, %v936_v49, %v1310_v56 }
 0x15a   : > { %v940_v62 = vpop.f32.mrf.mxu0  ;;  %v1116_v63 = vpop.f32.mrf.mxu1 }
 0x15b   : > { %vm1225_vm6 = vcmp.gt.f32.partialorder %v939_v59, 0.0  ;;  %v1311_v0 = vmul.f32 0.01, %v939_v59  ;;  %vm1269_vm7 = vcmp.gt.f32.partialorder %v1115_v60, 0.0  ;;  %v1355_v1 = vmul.f32 0.01, %v1115_v60 }
 0x15c   : > { %v943_v3 = vpop.f32.mrf.mxu0  ;;  %v1119_v4 = vpop.f32.mrf.mxu1 }
 0x15d   : > { %v1397_v5 = vsel %vm1225_vm6, %v939_v59, %v1311_v0  ;;  %v1441_v6 = vsel %vm1269_vm7, %v1115_v60, %v1355_v1  ;;  %v944_v7 = vadd.f32 %v2894_v39, %v943_v3  ;;  %v1120_v8 = vadd.f32 %v2894_v39, %v1119_v4 }
 0x15e   : > { %v2284_v9 = vpack.c.bf16 %v1397_v5, %v1396_v2  ;;  %v2394_v10 = vpack.c.bf16 %v1441_v6, %v1440_v61  ;;  %v945_v11 = vpop.f32.mrf.mxu0  ;;  %v1121_v12 = vpop.f32.mrf.mxu1 }
 0x15f   : > { %vm1270_vm8 = vcmp.gt.f32.partialorder %v1120_v8, 0.0  ;;  %v1356_v13 = vmul.f32 0.01, %v1120_v8  ;;  %v1312_v14 = vmul.f32 0.01, %v944_v7  ;;  %vm1226_vm9 = vcmp.gt.f32.partialorder %v944_v7, 0.0 }
 0x160   : > { %2459 = vst [vmem:[%s2904_s4 + $0x48] sm:$0xff] %v2284_v9   ;;  %2481 = vst [vmem:[%s2904_s4 + $0xf8] sm:$0xff] %v2394_v10   ;;  %v946_v15 = vpop.f32.mrf.mxu0  ;;  %v1122_v16 = vpop.f32.mrf.mxu1 }
 0x161   : > { %v947_v17 = vadd.f32 %v2894_v39, %v946_v15  ;;  %v1123_v18 = vadd.f32 %v2894_v39, %v1122_v16  ;;  %v1442_v19 = vsel %vm1270_vm8, %v1120_v8, %v1356_v13  ;;  %v1398_v24 = vsel %vm1226_vm9, %v944_v7, %v1312_v14 }
 0x162   : > { %v948_v20 = vpop.f32.mrf.mxu0  ;;  %v1124_v21 = vpop.f32.mrf.mxu1 }
 0x163   : > { %vm1227_vm10 = vcmp.gt.f32.partialorder %v947_v17, 0.0  ;;  %v1313_v22 = vmul.f32 0.01, %v947_v17  ;;  %vm1271_vm11 = vcmp.gt.f32.partialorder %v1123_v18, 0.0  ;;  %v1357_v23 = vmul.f32 0.01, %v1123_v18 }
 0x164   : > { %v951_v25 = vpop.f32.mrf.mxu0  ;;  %v1127_v26 = vpop.f32.mrf.mxu1 }
 0x165   : > { %v1399_v27 = vsel %vm1227_vm10, %v947_v17, %v1313_v22  ;;  %v1443_v28 = vsel %vm1271_vm11, %v1123_v18, %v1357_v23  ;;  %v952_v29 = vadd.f32 %v2894_v39, %v951_v25  ;;  %v1128_v30 = vadd.f32 %v2894_v39, %v1127_v26 }
 0x166   : > { %v2289_v31 = vpack.c.bf16 %v1399_v27, %v1398_v24  ;;  %v2399_v32 = vpack.c.bf16 %v1443_v28, %v1442_v19  ;;  %v953_v33 = vpop.f32.mrf.mxu0  ;;  %v1129_v34 = vpop.f32.mrf.mxu1 }
 0x167   : > { %vm1272_vm12 = vcmp.gt.f32.partialorder %v1128_v30, 0.0  ;;  %v1358_v35 = vmul.f32 0.01, %v1128_v30  ;;  %v1314_v36 = vmul.f32 0.01, %v952_v29  ;;  %vm1228_vm13 = vcmp.gt.f32.partialorder %v952_v29, 0.0 }
 0x168   : > { %2460 = vst [vmem:[%s2904_s4 + $0x50] sm:$0xff] %v2289_v31   ;;  %2482 = vst [vmem:[%s2904_s4 + $0x100] sm:$0xff] %v2399_v32   ;;  %v954_v37 = vpop.f32.mrf.mxu0  ;;  %v1130_v38 = vpop.f32.mrf.mxu1 }
 0x169   : > { %v955_v40 = vadd.f32 %v2894_v39, %v954_v37  ;;  %v1131_v41 = vadd.f32 %v2894_v39, %v1130_v38  ;;  %v1444_v42 = vsel %vm1272_vm12, %v1128_v30, %v1358_v35  ;;  %v1400_v47 = vsel %vm1228_vm13, %v952_v29, %v1314_v36 }
 0x16a   : > { %v956_v43 = vpop.f32.mrf.mxu0  ;;  %v1132_v44 = vpop.f32.mrf.mxu1 }
 0x16b   : > { %vm1229_vm14 = vcmp.gt.f32.partialorder %v955_v40, 0.0  ;;  %v1315_v45 = vmul.f32 0.01, %v955_v40  ;;  %vm1273_vm15 = vcmp.gt.f32.partialorder %v1131_v41, 0.0  ;;  %v1359_v46 = vmul.f32 0.01, %v1131_v41 }
 0x16c   : > { %v959_v48 = vpop.f32.mrf.mxu0  ;;  %v1135_v49 = vpop.f32.mrf.mxu1 }
 0x16d   : > { %v1401_v50 = vsel %vm1229_vm14, %v955_v40, %v1315_v45  ;;  %v1445_v51 = vsel %vm1273_vm15, %v1131_v41, %v1359_v46  ;;  %v960_v52 = vadd.f32 %v2894_v39, %v959_v48  ;;  %v1136_v53 = vadd.f32 %v2894_v39, %v1135_v49 }
 0x16e   : > { %v2294_v54 = vpack.c.bf16 %v1401_v50, %v1400_v47  ;;  %v2404_v55 = vpack.c.bf16 %v1445_v51, %v1444_v42  ;;  %v961_v56 = vpop.f32.mrf.mxu0  ;;  %v1137_v57 = vpop.f32.mrf.mxu1 }
 0x16f   : > { %vm1274_vm0 = vcmp.gt.f32.partialorder %v1136_v53, 0.0  ;;  %v1360_v58 = vmul.f32 0.01, %v1136_v53  ;;  %v1316_v59 = vmul.f32 0.01, %v960_v52  ;;  %vm1230_vm1 = vcmp.gt.f32.partialorder %v960_v52, 0.0 }
 0x170   : > { %2461 = vst [vmem:[%s2904_s4 + $0x58] sm:$0xff] %v2294_v54   ;;  %2483 = vst [vmem:[%s2904_s4 + $0x108] sm:$0xff] %v2404_v55   ;;  %v962_v60 = vpop.f32.mrf.mxu0  ;;  %v1138_v61 = vpop.f32.mrf.mxu1 }
 0x171   : > { %v963_v62 = vadd.f32 %v2894_v39, %v962_v60  ;;  %v1139_v63 = vadd.f32 %v2894_v39, %v1138_v61  ;;  %v1446_v0 = vsel %vm1274_vm0, %v1136_v53, %v1360_v58  ;;  %v1402_v5 = vsel %vm1230_vm1, %v960_v52, %v1316_v59 }
 0x172   : > { %v964_v1 = vpop.f32.mrf.mxu0  ;;  %v1140_v2 = vpop.f32.mrf.mxu1 }
 0x173   : > { %vm1231_vm2 = vcmp.gt.f32.partialorder %v963_v62, 0.0  ;;  %v1317_v3 = vmul.f32 0.01, %v963_v62  ;;  %vm1275_vm3 = vcmp.gt.f32.partialorder %v1139_v63, 0.0  ;;  %v1361_v4 = vmul.f32 0.01, %v1139_v63 }
 0x174   : > { %v967_v6 = vpop.f32.mrf.mxu0  ;;  %v1143_v7 = vpop.f32.mrf.mxu1 }
 0x175   : > { %v1403_v8 = vsel %vm1231_vm2, %v963_v62, %v1317_v3  ;;  %v1447_v9 = vsel %vm1275_vm3, %v1139_v63, %v1361_v4  ;;  %v968_v10 = vadd.f32 %v2894_v39, %v967_v6  ;;  %v1144_v11 = vadd.f32 %v2894_v39, %v1143_v7 }
 0x176   : > { %v2299_v12 = vpack.c.bf16 %v1403_v8, %v1402_v5  ;;  %v2409_v13 = vpack.c.bf16 %v1447_v9, %v1446_v0  ;;  %v969_v14 = vpop.f32.mrf.mxu0  ;;  %v1145_v15 = vpop.f32.mrf.mxu1 }
 0x177   : > { %vm1276_vm4 = vcmp.gt.f32.partialorder %v1144_v11, 0.0  ;;  %v1362_v16 = vmul.f32 0.01, %v1144_v11  ;;  %v1318_v17 = vmul.f32 0.01, %v968_v10  ;;  %vm1232_vm5 = vcmp.gt.f32.partialorder %v968_v10, 0.0 }
 0x178   : > { %2462 = vst [vmem:[%s2904_s4 + $0x60] sm:$0xff] %v2299_v12   ;;  %2484 = vst [vmem:[%s2904_s4 + $0x110] sm:$0xff] %v2409_v13   ;;  %v970_v18 = vpop.f32.mrf.mxu0  ;;  %v1146_v19 = vpop.f32.mrf.mxu1 }
 0x179   : > { %v971_v20 = vadd.f32 %v2894_v39, %v970_v18  ;;  %v1147_v21 = vadd.f32 %v2894_v39, %v1146_v19  ;;  %v1448_v22 = vsel %vm1276_vm4, %v1144_v11, %v1362_v16  ;;  %v1404_v27 = vsel %vm1232_vm5, %v968_v10, %v1318_v17 }
 0x17a   : > { %v972_v23 = vpop.f32.mrf.mxu0  ;;  %v1148_v24 = vpop.f32.mrf.mxu1 }
 0x17b   : > { %vm1233_vm6 = vcmp.gt.f32.partialorder %v971_v20, 0.0  ;;  %v1319_v25 = vmul.f32 0.01, %v971_v20  ;;  %vm1277_vm7 = vcmp.gt.f32.partialorder %v1147_v21, 0.0  ;;  %v1363_v26 = vmul.f32 0.01, %v1147_v21 }
 0x17c   : > { %v975_v28 = vpop.f32.mrf.mxu0  ;;  %v1151_v29 = vpop.f32.mrf.mxu1 }
 0x17d   : > { %v1405_v30 = vsel %vm1233_vm6, %v971_v20, %v1319_v25  ;;  %v1449_v31 = vsel %vm1277_vm7, %v1147_v21, %v1363_v26  ;;  %v976_v32 = vadd.f32 %v2894_v39, %v975_v28  ;;  %v1152_v33 = vadd.f32 %v2894_v39, %v1151_v29 }
 0x17e   : > { %v2304_v34 = vpack.c.bf16 %v1405_v30, %v1404_v27  ;;  %v2414_v35 = vpack.c.bf16 %v1449_v31, %v1448_v22  ;;  %v977_v36 = vpop.f32.mrf.mxu0  ;;  %v1153_v37 = vpop.f32.mrf.mxu1 }
 0x17f   : > { %vm1278_vm8 = vcmp.gt.f32.partialorder %v1152_v33, 0.0  ;;  %v1364_v38 = vmul.f32 0.01, %v1152_v33  ;;  %v1320_v40 = vmul.f32 0.01, %v976_v32  ;;  %vm1234_vm9 = vcmp.gt.f32.partialorder %v976_v32, 0.0 }
 0x180   : > { %2463 = vst [vmem:[%s2904_s4 + $0x68] sm:$0xff] %v2304_v34   ;;  %2485 = vst [vmem:[%s2904_s4 + $0x118] sm:$0xff] %v2414_v35   ;;  %v978_v41 = vpop.f32.mrf.mxu0  ;;  %v1154_v42 = vpop.f32.mrf.mxu1 }
 0x181   : > { %v979_v43 = vadd.f32 %v2894_v39, %v978_v41  ;;  %v1155_v44 = vadd.f32 %v2894_v39, %v1154_v42  ;;  %v1450_v45 = vsel %vm1278_vm8, %v1152_v33, %v1364_v38  ;;  %v1406_v50 = vsel %vm1234_vm9, %v976_v32, %v1320_v40 }
 0x182   : > { %v980_v46 = vpop.f32.mrf.mxu0  ;;  %v1156_v47 = vpop.f32.mrf.mxu1 }
 0x183   : > { %vm1235_vm10 = vcmp.gt.f32.partialorder %v979_v43, 0.0  ;;  %v1321_v48 = vmul.f32 0.01, %v979_v43  ;;  %vm1279_vm11 = vcmp.gt.f32.partialorder %v1155_v44, 0.0  ;;  %v1365_v49 = vmul.f32 0.01, %v1155_v44 }
 0x184   : > { %v983_v51 = vpop.f32.mrf.mxu0  ;;  %v1159_v52 = vpop.f32.mrf.mxu1 }
 0x185   : > { %v1407_v53 = vsel %vm1235_vm10, %v979_v43, %v1321_v48  ;;  %v1451_v54 = vsel %vm1279_vm11, %v1155_v44, %v1365_v49  ;;  %v984_v55 = vadd.f32 %v2894_v39, %v983_v51  ;;  %v1160_v56 = vadd.f32 %v2894_v39, %v1159_v52 }
 0x186   : > { %v2309_v57 = vpack.c.bf16 %v1407_v53, %v1406_v50  ;;  %v2419_v58 = vpack.c.bf16 %v1451_v54, %v1450_v45  ;;  %v985_v59 = vpop.f32.mrf.mxu0  ;;  %v1161_v60 = vpop.f32.mrf.mxu1 }
 0x187   : > { %vm1280_vm12 = vcmp.gt.f32.partialorder %v1160_v56, 0.0  ;;  %v1366_v61 = vmul.f32 0.01, %v1160_v56  ;;  %v1322_v62 = vmul.f32 0.01, %v984_v55  ;;  %vm1236_vm13 = vcmp.gt.f32.partialorder %v984_v55, 0.0 }
 0x188   : > { %2464 = vst [vmem:[%s2904_s4 + $0x70] sm:$0xff] %v2309_v57   ;;  %2486 = vst [vmem:[%s2904_s4 + $0x120] sm:$0xff] %v2419_v58   ;;  %v986_v63 = vpop.f32.mrf.mxu0  ;;  %v1162_v0 = vpop.f32.mrf.mxu1 }
 0x189   : > { %v987_v1 = vadd.f32 %v2894_v39, %v986_v63  ;;  %v1163_v2 = vadd.f32 %v2894_v39, %v1162_v0  ;;  %v1452_v3 = vsel %vm1280_vm12, %v1160_v56, %v1366_v61  ;;  %v1408_v8 = vsel %vm1236_vm13, %v984_v55, %v1322_v62 }
 0x18a   : > { %v988_v4 = vpop.f32.mrf.mxu0  ;;  %v1164_v5 = vpop.f32.mrf.mxu1 }
 0x18b   : > { %vm1237_vm14 = vcmp.gt.f32.partialorder %v987_v1, 0.0  ;;  %v1323_v6 = vmul.f32 0.01, %v987_v1  ;;  %vm1281_vm15 = vcmp.gt.f32.partialorder %v1163_v2, 0.0  ;;  %v1367_v7 = vmul.f32 0.01, %v1163_v2 }
 0x18c   : > { %v991_v9 = vpop.f32.mrf.mxu0  ;;  %v1167_v10 = vpop.f32.mrf.mxu1  ;;  %v3015_v4 = vld [vmem:[%s3041_s2] ss:$0 sm:$0xff] }
 0x18d   : > { %v1409_v11 = vsel %vm1237_vm14, %v987_v1, %v1323_v6  ;;  %v1453_v12 = vsel %vm1281_vm15, %v1163_v2, %v1367_v7  ;;  %v992_v13 = vadd.f32 %v2894_v39, %v991_v9  ;;  %v1168_v14 = vadd.f32 %v2894_v39, %v1167_v10 }
 0x18e   : > { %v2314_v15 = vpack.c.bf16 %v1409_v11, %v1408_v8  ;;  %v2424_v16 = vpack.c.bf16 %v1453_v12, %v1452_v3  ;;  %v993_v17 = vpop.f32.mrf.mxu0  ;;  %v1169_v18 = vpop.f32.mrf.mxu1 }
 0x18f   : > { %vm1282_vm0 = vcmp.gt.f32.partialorder %v1168_v14, 0.0  ;;  %v1368_v19 = vmul.f32 0.01, %v1168_v14  ;;  %v1324_v20 = vmul.f32 0.01, %v992_v13  ;;  %vm1238_vm1 = vcmp.gt.f32.partialorder %v992_v13, 0.0 }
 0x190   : > { %2465 = vst [vmem:[%s2904_s4 + $0x78] sm:$0xff] %v2314_v15   ;;  %2487 = vst [vmem:[%s2904_s4 + $0x128] sm:$0xff] %v2424_v16   ;;  %v994_v21 = vpop.f32.mrf.mxu0  ;;  %v1170_v22 = vpop.f32.mrf.mxu1 }
 0x191   : > { %v995_v23 = vadd.f32 %v2894_v39, %v994_v21  ;;  %v1171_v24 = vadd.f32 %v2894_v39, %v1170_v22  ;;  %v1454_v25 = vsel %vm1282_vm0, %v1168_v14, %v1368_v19  ;;  %v1410_v30 = vsel %vm1238_vm1, %v992_v13, %v1324_v20 }
 0x192   : > { %v996_v26 = vpop.f32.mrf.mxu0  ;;  %v1172_v27 = vpop.f32.mrf.mxu1 }
 0x193   : > { %vm1239_vm2 = vcmp.gt.f32.partialorder %v995_v23, 0.0  ;;  %v1325_v28 = vmul.f32 0.01, %v995_v23  ;;  %vm1283_vm3 = vcmp.gt.f32.partialorder %v1171_v24, 0.0  ;;  %v1369_v29 = vmul.f32 0.01, %v1171_v24 }
 0x194   : > { %v999_v31 = vpop.f32.mrf.mxu0  ;;  %v1175_v32 = vpop.f32.mrf.mxu1 }
 0x195   : > { %v1411_v33 = vsel %vm1239_vm2, %v995_v23, %v1325_v28  ;;  %v1455_v34 = vsel %vm1283_vm3, %v1171_v24, %v1369_v29  ;;  %v1000_v35 = vadd.f32 %v2894_v39, %v999_v31  ;;  %v1176_v36 = vadd.f32 %v2894_v39, %v1175_v32 }
 0x196   : > { %v2319_v37 = vpack.c.bf16 %v1411_v33, %v1410_v30  ;;  %v2429_v38 = vpack.c.bf16 %v1455_v34, %v1454_v25  ;;  %v1001_v40 = vpop.f32.mrf.mxu0  ;;  %v1177_v41 = vpop.f32.mrf.mxu1 }
 0x197   : > { %vm1284_vm4 = vcmp.gt.f32.partialorder %v1176_v36, 0.0  ;;  %v1370_v42 = vmul.f32 0.01, %v1176_v36  ;;  %v1326_v43 = vmul.f32 0.01, %v1000_v35  ;;  %vm1240_vm5 = vcmp.gt.f32.partialorder %v1000_v35, 0.0 }
 0x198   : > { %2466 = vst [vmem:[%s2904_s4 + $0x80] sm:$0xff] %v2319_v37   ;;  %2488 = vst [vmem:[%s2904_s4 + $0x130] sm:$0xff] %v2429_v38   ;;  %v1002_v44 = vpop.f32.mrf.mxu0  ;;  %v1178_v45 = vpop.f32.mrf.mxu1 }
 0x199   : > { %v1003_v46 = vadd.f32 %v2894_v39, %v1002_v44  ;;  %v1179_v47 = vadd.f32 %v2894_v39, %v1178_v45  ;;  %v1456_v48 = vsel %vm1284_vm4, %v1176_v36, %v1370_v42  ;;  %v1412_v53 = vsel %vm1240_vm5, %v1000_v35, %v1326_v43 }
 0x19a   : > { %v1004_v49 = vpop.f32.mrf.mxu0  ;;  %v1180_v50 = vpop.f32.mrf.mxu1 }
 0x19b   : > { %vm1241_vm6 = vcmp.gt.f32.partialorder %v1003_v46, 0.0  ;;  %v1327_v51 = vmul.f32 0.01, %v1003_v46  ;;  %vm1285_vm7 = vcmp.gt.f32.partialorder %v1179_v47, 0.0  ;;  %v1371_v52 = vmul.f32 0.01, %v1179_v47 }
 0x19c   : > { %v1007_v54 = vpop.f32.mrf.mxu0  ;;  %v1183_v55 = vpop.f32.mrf.mxu1 }
 0x19d   : > { %v1413_v56 = vsel %vm1241_vm6, %v1003_v46, %v1327_v51  ;;  %v1457_v57 = vsel %vm1285_vm7, %v1179_v47, %v1371_v52  ;;  %v1008_v58 = vadd.f32 %v2894_v39, %v1007_v54  ;;  %v1184_v59 = vadd.f32 %v2894_v39, %v1183_v55 }
 0x19e   : > { %v2324_v60 = vpack.c.bf16 %v1413_v56, %v1412_v53  ;;  %v2434_v61 = vpack.c.bf16 %v1457_v57, %v1456_v48  ;;  %v1009_v62 = vpop.f32.mrf.mxu0  ;;  %v1185_v63 = vpop.f32.mrf.mxu1 }
 0x19f   : > { %vm1286_vm8 = vcmp.gt.f32.partialorder %v1184_v59, 0.0  ;;  %v1372_v0 = vmul.f32 0.01, %v1184_v59  ;;  %v1328_v1 = vmul.f32 0.01, %v1008_v58  ;;  %vm1242_vm9 = vcmp.gt.f32.partialorder %v1008_v58, 0.0 }
 0x1a0   : > { %2467 = vst [vmem:[%s2904_s4 + $0x88] sm:$0xff] %v2324_v60   ;;  %2489 = vst [vmem:[%s2904_s4 + $0x138] sm:$0xff] %v2434_v61   ;;  %v1010_v2 = vpop.f32.mrf.mxu0  ;;  %v1186_v3 = vpop.f32.mrf.mxu1 }
 0x1a1   : > { %v1011_v5 = vadd.f32 %v3015_v4, %v1010_v2  ;;  %v1187_v39 = vadd.f32 %v3015_v4, %v1186_v3  ;;  %v1458_v6 = vsel %vm1286_vm8, %v1184_v59, %v1372_v0  ;;  %v1414_v11 = vsel %vm1242_vm9, %v1008_v58, %v1328_v1 }
 0x1a2   : > { %v1012_v7 = vpop.f32.mrf.mxu0  ;;  %v1188_v8 = vpop.f32.mrf.mxu1 }
 0x1a3   : > { %vm1243_vm10 = vcmp.gt.f32.partialorder %v1011_v5, 0.0  ;;  %v1329_v9 = vmul.f32 0.01, %v1011_v5  ;;  %vm1287_vm11 = vcmp.gt.f32.partialorder %v1187_v39, 0.0  ;;  %v1373_v10 = vmul.f32 0.01, %v1187_v39 }
 0x1a4   : > { %v1015_v12 = vpop.f32.mrf.mxu0  ;;  %v1191_v13 = vpop.f32.mrf.mxu1 }
 0x1a5   : > { %v1415_v14 = vsel %vm1243_vm10, %v1011_v5, %v1329_v9  ;;  %v1459_v15 = vsel %vm1287_vm11, %v1187_v39, %v1373_v10  ;;  %v1016_v16 = vadd.f32 %v3015_v4, %v1015_v12  ;;  %v1192_v17 = vadd.f32 %v3015_v4, %v1191_v13 }
 0x1a6   : > { %v2329_v18 = vpack.c.bf16 %v1415_v14, %v1414_v11  ;;  %v2439_v19 = vpack.c.bf16 %v1459_v15, %v1458_v6  ;;  %v1017_v20 = vpop.f32.mrf.mxu0  ;;  %v1193_v21 = vpop.f32.mrf.mxu1 }
 0x1a7   : > { %vm1288_vm12 = vcmp.gt.f32.partialorder %v1192_v17, 0.0  ;;  %v1374_v22 = vmul.f32 0.01, %v1192_v17  ;;  %v1330_v23 = vmul.f32 0.01, %v1016_v16  ;;  %vm1244_vm13 = vcmp.gt.f32.partialorder %v1016_v16, 0.0 }
 0x1a8   : > { %2468 = vst [vmem:[%s2904_s4 + $0x90] sm:$0xff] %v2329_v18   ;;  %2490 = vst [vmem:[%s2904_s4 + $0x140] sm:$0xff] %v2439_v19   ;;  %v1018_v24 = vpop.f32.mrf.mxu0  ;;  %v1194_v25 = vpop.f32.mrf.mxu1 }
 0x1a9   : > { %v1019_v26 = vadd.f32 %v3015_v4, %v1018_v24  ;;  %v1195_v27 = vadd.f32 %v3015_v4, %v1194_v25  ;;  %v1460_v28 = vsel %vm1288_vm12, %v1192_v17, %v1374_v22  ;;  %v1416_v33 = vsel %vm1244_vm13, %v1016_v16, %v1330_v23 }
 0x1aa   : > { %v1020_v29 = vpop.f32.mrf.mxu0  ;;  %v1196_v30 = vpop.f32.mrf.mxu1 }
 0x1ab   : > { %vm1245_vm14 = vcmp.gt.f32.partialorder %v1019_v26, 0.0  ;;  %v1331_v31 = vmul.f32 0.01, %v1019_v26  ;;  %vm1289_vm15 = vcmp.gt.f32.partialorder %v1195_v27, 0.0  ;;  %v1375_v32 = vmul.f32 0.01, %v1195_v27 }
 0x1ac   : > { %v1023_v34 = vpop.f32.mrf.mxu0  ;;  %v1199_v35 = vpop.f32.mrf.mxu1 }
 0x1ad   : > { %v1417_v36 = vsel %vm1245_vm14, %v1019_v26, %v1331_v31  ;;  %v1461_v37 = vsel %vm1289_vm15, %v1195_v27, %v1375_v32  ;;  %v1024_v38 = vadd.f32 %v3015_v4, %v1023_v34  ;;  %v1200_v40 = vadd.f32 %v3015_v4, %v1199_v35 }
 0x1ae   : > { %v2334_v41 = vpack.c.bf16 %v1417_v36, %v1416_v33  ;;  %v2444_v42 = vpack.c.bf16 %v1461_v37, %v1460_v28  ;;  %v1025_v43 = vpop.f32.mrf.mxu0  ;;  %v1201_v44 = vpop.f32.mrf.mxu1 }
 0x1af   : > { %vm1290_vm0 = vcmp.gt.f32.partialorder %v1200_v40, 0.0  ;;  %v1376_v45 = vmul.f32 0.01, %v1200_v40  ;;  %v1332_v48 = vmul.f32 0.01, %v1024_v38  ;;  %vm1246_vm1 = vcmp.gt.f32.partialorder %v1024_v38, 0.0 }
 0x1b0   : > { %2469 = vst [vmem:[%s2904_s4 + $0x98] sm:$0xff] %v2334_v41   ;;  %2491 = vst [vmem:[%s2904_s4 + $0x148] sm:$0xff] %v2444_v42   ;;  %v1026_v46 = vpop.f32.mrf.mxu0  ;;  %v1202_v47 = vpop.f32.mrf.mxu1 }
 0x1b1   : > { %v1027_v49 = vadd.f32 %v3015_v4, %v1026_v46  ;;  %v1203_v50 = vadd.f32 %v3015_v4, %v1202_v47  ;;  %v1462_v51 = vsel %vm1290_vm0, %v1200_v40, %v1376_v45  ;;  %v1418_v57 = vsel %vm1246_vm1, %v1024_v38, %v1332_v48 }
 0x1b2   : > { %v1028_v52 = vpop.f32.mrf.mxu0  ;;  %v1204_v53 = vpop.f32.mrf.mxu1 }
 0x1b3   : > { %vm1247_vm2 = vcmp.gt.f32.partialorder %v1027_v49, 0.0  ;;  %v1333_v54 = vmul.f32 0.01, %v1027_v49  ;;  %vm1291_vm3 = vcmp.gt.f32.partialorder %v1203_v50, 0.0  ;;  %v1377_v55 = vmul.f32 0.01, %v1203_v50 }
 0x1b4   : > { %v1031_v56 = vpop.f32.mrf.mxu0 }
 0x1b5   : > { %v1419_v58 = vsel %vm1247_vm2, %v1027_v49, %v1333_v54  ;;  %v1463_v59 = vsel %vm1291_vm3, %v1203_v50, %v1377_v55  ;;  %v1032_v60 = vadd.f32 %v3015_v4, %v1031_v56 }
 0x1b6   : > { %v2339_v61 = vpack.c.bf16 %v1419_v58, %v1418_v57  ;;  %v2449_v62 = vpack.c.bf16 %v1463_v59, %v1462_v51  ;;  %v1033_v63 = vpop.f32.mrf.mxu0 }
 0x1b7   : > { %v1334_v1 = vmul.f32 0.01, %v1032_v60  ;;  %vm1248_vm4 = vcmp.gt.f32.partialorder %v1032_v60, 0.0 }
 0x1b8   : > { %2470 = vst [vmem:[%s2904_s4 + $0xa0] sm:$0xff] %v2339_v61   ;;  %2492 = vst [vmem:[%s2904_s4 + $0x150] sm:$0xff] %v2449_v62   ;;  %v1034_v0 = vpop.f32.mrf.mxu0 }
 0x1b9   : > { %v1035_v2 = vadd.f32 %v3015_v4, %v1034_v0  ;;  %v1420_v39 = vsel %vm1248_vm4, %v1032_v60, %v1334_v1 }
 0x1ba   : > { %v1036_v3 = vpop.f32.mrf.mxu0 }
 0x1bb   : > { %vm1249_vm5 = vcmp.gt.f32.partialorder %v1035_v2, 0.0  ;;  %v1335_v5 = vmul.f32 0.01, %v1035_v2 }
 0x1bd   : > { %v1421_v6 = vsel %vm1249_vm5, %v1035_v2, %v1335_v5 }
 0x1be   : > { %v2344_v7 = vpack.c.bf16 %v1421_v6, %v1420_v39 }
 0x1c0   : > { %2471 = vst [vmem:[%s2904_s4 + $0xa8] sm:$0xff] %v2344_v7  }
 0x1c1 PF: > { %s13_s12 = sadd.s32 1, %s2686_s12  }
 0x1c2   : > { %p10_p4 = scmp.ge.s32.totalorder %s13_s12, 4  }
 0x1c4   :  { %12 = sbr.rel (!%p10_p4) target bundleno = 1 (0x1), region = 62 }

// kernel: complex_cnn_forward.4
= control target key start
LH: loop header
LB: loop body
LE: loop exit
PB: predicated region body
PF: predicated region fallthrough
CT: control target
= control target key end

     0   :  { %s1249_s1 = inlined_call_operand.vmem [shape: bf16[640,128], index: 1, kind: input, shape index: {}]   ;;  %s1250_s0 = inlined_call_operand.vmem [shape: bf16[64,640], index: 0, kind: input, shape index: {}]   ;;  %s1251_s2 = inlined_call_operand.vmem [shape: f32[1,128], index: 2, kind: input, shape index: {}]   ;;  %s1252_s3 = inlined_call_operand.vmem [shape: bf16[64,128], index: 3, kind: output, shape index: {}]  }
   0x1   :  { %v965_v0 = vld [vmem:[%s1249_s1 + $0x78] sm:$0xff]   ;;  %v969_v4 = vld [vmem:[%s1249_s1 + $0x70] sm:$0xff]   ;;  %v973_v8 = vld [vmem:[%s1249_s1 + $0x68] sm:$0xff]  }
   0x2   :  { %v966_v1 = vld [vmem:[%s1249_s1 + $0xf8] sm:$0xff]   ;;  %833 = vmatprep.subr.bf16.mxu0 %v965_v0  ;;  %v970_v5 = vld [vmem:[%s1249_s1 + $0xf0] sm:$0xff]   ;;  %v974_v9 = vld [vmem:[%s1249_s1 + $0xe8] sm:$0xff]  }
   0x3   :  { %v967_v2 = vld [vmem:[%s1249_s1 + $0x38] sm:$0xff]   ;;  %873 = vmatprep.subr.bf16.mxu1 %v966_v1  ;;  %v971_v6 = vld [vmem:[%s1249_s1 + $0x30] sm:$0xff]   ;;  %v975_v10 = vld [vmem:[%s1249_s1 + $0x28] sm:$0xff]  }
   0x4   :  { %v968_v3 = vld [vmem:[%s1249_s1 + $0xb8] sm:$0xff]   ;;  %834 = vmatpush3.bf16.msra.mxu0 %v967_v2  ;;  %v972_v7 = vld [vmem:[%s1249_s1 + $0xb0] sm:$0xff]   ;;  %v976_v11 = vld [vmem:[%s1249_s1 + $0xa8] sm:$0xff]  }
   0x5   :  { %874 = vmatpush3.bf16.msra.mxu1 %v968_v3  ;;  %835 = vmatprep.subr.bf16.mxu0 %v969_v4  ;;  %v977_v12 = vld [vmem:[%s1249_s1 + $0x60] sm:$0xff]   ;;  %v981_v16 = vld [vmem:[%s1249_s1 + $0x58] sm:$0xff]   ;;  %v985_v20 = vld [vmem:[%s1249_s1 + $0x50] sm:$0xff]  }
   0x6   :  { %875 = vmatprep.subr.bf16.mxu1 %v970_v5  ;;  %v978_v13 = vld [vmem:[%s1249_s1 + $0xe0] sm:$0xff]   ;;  %v982_v17 = vld [vmem:[%s1249_s1 + $0xd8] sm:$0xff]   ;;  %v986_v21 = vld [vmem:[%s1249_s1 + $0xd0] sm:$0xff]  }
   0x7   :  { %v979_v14 = vld [vmem:[%s1249_s1 + $0x20] sm:$0xff]   ;;  %v983_v18 = vld [vmem:[%s1249_s1 + $0x18] sm:$0xff]   ;;  %v987_v22 = vld [vmem:[%s1249_s1 + $0x10] sm:$0xff]  }
   0x8   :  { %836 = vmatpush3.bf16.msra.mxu0 %v971_v6  ;;  %v980_v15 = vld [vmem:[%s1249_s1 + $0xa0] sm:$0xff]   ;;  %v984_v19 = vld [vmem:[%s1249_s1 + $0x98] sm:$0xff]   ;;  %v988_v23 = vld [vmem:[%s1249_s1 + $0x90] sm:$0xff]  }
   0x9   :  { %876 = vmatpush3.bf16.msra.mxu1 %v972_v7  ;;  %837 = vmatprep.subr.bf16.mxu0 %v973_v8  ;;  %v989_v24 = vld [vmem:[%s1249_s1 + $0x48] sm:$0xff]   ;;  %v993_v28 = vld [vmem:[%s1249_s1 + $0x40] sm:$0xff]   ;;  %v1003_v36 = vld [vmem:[%s1249_s1 + $0x138] sm:$0xff]  }
   0xa   :  { %877 = vmatprep.subr.bf16.mxu1 %v974_v9  ;;  %v990_v25 = vld [vmem:[%s1249_s1 + $0xc8] sm:$0xff]   ;;  %v994_v29 = vld [vmem:[%s1249_s1 + $0xc0] sm:$0xff]   ;;  %v1004_v37 = vld [vmem:[%s1249_s1 + $0x130] sm:$0xff]  }
   0xb   :  { %v991_v26 = vld [vmem:[%s1249_s1 + $0x8] sm:$0xff]   ;;  %v995_v30 = vld [vmem:[%s1249_s1] sm:$0xff]   ;;  %v1015_v45 = vld [vmem:[%s1250_s0 + $0x5c] ss:$20 sps:$4 sm:$0xff]  }
   0xc   :  { %838 = vmatpush3.bf16.msra.mxu0 %v975_v10  ;;  %v992_v27 = vld [vmem:[%s1249_s1 + $0x88] sm:$0xff]   ;;  %v996_v31 = vld [vmem:[%s1249_s1 + $0x80] sm:$0xff]   ;;  %v1019_v46 = vld [vmem:[%s1249_s1 + $0x118] sm:$0xff]  }
   0xd   :  { %878 = vmatpush3.bf16.msra.mxu1 %v976_v11  ;;  %839 = vmatprep.subr.bf16.mxu0 %v977_v12  ;;  %v997_v32 = vld [vmem:[%s1250_s0] ss:$20 sps:$4 sm:$0xff]   ;;  %v999_v33 = vld [vmem:[%s1250_s0 + $0x4] ss:$20 sps:$4 sm:$0xff]   ;;  %v1000_v34 = vld [vmem:[%s1250_s0 + $0x8] ss:$20 sps:$4 sm:$0xff]  }
   0xe   :  { %879 = vmatprep.subr.bf16.mxu1 %v978_v13  ;;  %v1002_v35 = vld [vmem:[%s1250_s0 + $0xc] ss:$20 sps:$4 sm:$0xff]   ;;  %502 = vmatprep.mubr.bf16.mxu0 %v999_v33  ;;  %v1007_v39 = vld [vmem:[%s1250_s0 + $0x34] ss:$20 sps:$4 sm:$0xff]   ;;  %v1010_v42 = vld [vmem:[%s1250_s0 + $0x30] ss:$20 sps:$4 sm:$0xff]  }
   0xf   :  { %567 = vmatprep.mubr.bf16.mxu1 %v1002_v35  ;;  %v1005_v38 = vld [vmem:[%s1250_s0 + $0x2c] ss:$20 sps:$4 sm:$0xff]   ;;  %v1009_v40 = vld [vmem:[%s1250_s0 + $0x28] ss:$20 sps:$4 sm:$0xff]   ;;  %v1017_v47 = vld [vmem:[%s1250_s0 + $0x50] ss:$20 sps:$4 sm:$0xff]  }
  0x10   :  { %840 = vmatpush3.bf16.msra.mxu0 %v979_v14  ;;  %v1011_v41 = vld [vmem:[%s1249_s1 + $0x128] sm:$0xff]   ;;  %v1012_v44 = vld [vmem:[%s1249_s1 + $0x120] sm:$0xff]   ;;  %v1021_v49 = vld [vmem:[%s1250_s0 + $0x7c] ss:$20 sps:$4 sm:$0xff]  }
  0x11   :  { %880 = vmatpush3.bf16.msra.mxu1 %v980_v15  ;;  %841 = vmatprep.subr.bf16.mxu0 %v981_v16  ;;  %v1013_v43 = vld [vmem:[%s1250_s0 + $0x54] ss:$20 sps:$4 sm:$0xff]   ;;  %v1018_v48 = vld [vmem:[%s1250_s0 + $0x58] ss:$20 sps:$4 sm:$0xff]   ;;  %v1029_v55 = vld [vmem:[%s1250_s0 + $0x10] ss:$20 sps:$4 sm:$0xff]  }
  0x12   :  { %881 = vmatprep.subr.bf16.mxu1 %v982_v17  ;;  %v1023_v50 = vld [vmem:[%s1250_s0 + $0x84] ss:$20 sps:$4 sm:$0xff]   ;;  %v1020_v51 = vld [vmem:[%s1249_s1 + $0x110] sm:$0xff]   ;;  %v1027_v52 = vld [vmem:[%s1249_s1 + $0x108] sm:$0xff]  }
  0x13   :  { %v1025_v53 = vld [vmem:[%s1250_s0 + $0x78] ss:$20 sps:$4 sm:$0xff]   ;;  %v1026_v54 = vld [vmem:[%s1250_s0 + $0x80] ss:$20 sps:$4 sm:$0xff]   ;;  %v1032_v59 = vld [vmem:[%s1250_s0 + $0x88] ss:$20 sps:$4 sm:$0xff]  }
  0x14   :  { %842 = vmatpush3.bf16.msra.mxu0 %v983_v18  ;;  %v1030_v56 = vld [vmem:[%s1250_s0 + $0x60] ss:$20 sps:$4 sm:$0xff]   ;;  %v1031_v58 = vld [vmem:[%s1250_s0 + $0x38] ss:$20 sps:$4 sm:$0xff]  }
  0x15   :  { %882 = vmatpush3.bf16.msra.mxu1 %v984_v19  ;;  %843 = vmatprep.subr.bf16.mxu0 %v985_v20  ;;  %v1028_v57 = vld [vmem:[%s1249_s1 + $0x100] sm:$0xff]  }
  0x16   :  { %883 = vmatprep.subr.bf16.mxu1 %v986_v21 }
  0x18   :  { %844 = vmatpush3.bf16.msra.mxu0 %v987_v22 }
  0x19   :  { %884 = vmatpush3.bf16.msra.mxu1 %v988_v23  ;;  %845 = vmatprep.subr.bf16.mxu0 %v989_v24  ;;  %v733_v23 = vld [vmem:[%s1251_s2] ss:$0 sm:$0xff] }
  0x1a   :  { %885 = vmatprep.subr.bf16.mxu1 %v990_v25 }
  0x1c   :  { %846 = vmatpush3.bf16.msra.mxu0 %v991_v26 }
  0x1d   :  { %886 = vmatpush3.bf16.msra.mxu1 %v992_v27  ;;  %847 = vmatprep.subr.bf16.mxu0 %v993_v28 }
  0x1e   :  { %887 = vmatprep.subr.bf16.mxu1 %v994_v29 }
  0x20   :  { %848 = vmatpush3.bf16.msra.mxu0 %v995_v30 }
  0x21   :  { %888 = vmatpush3.bf16.msra.mxu1 %v996_v31  ;;  %925 = vmatprep.subr.bf16.mxu0 %v1003_v36 }
  0x22   :  { %949 = vmatprep.subr.bf16.mxu1 %v1003_v36 }
  0x23   :  { %503 = vmatmul.mubr.bf16.vlgmr.msra.gmra.mxu0 %v997_v32 }
  0x24   :  { %568 = vmatmul.mubr.bf16.vlgmr.msra.gmra.mxu1 %v1000_v34  ;;  %926 = vmatpush3.bf16.msra.mxu0 %v1003_v36 }
  0x25   :  { %957 = vmatpush3.bf16.msra.mxu1 %v1003_v36  ;;  %927 = vmatprep.subr.bf16.mxu0 %v1004_v37 }
  0x26   :  { %950 = vmatprep.subr.bf16.mxu1 %v1004_v37  ;;  %510 = vmatprep.mubr.bf16.mxu0 %v1005_v38 }
  0x27   :  { %575 = vmatprep.mubr.bf16.mxu1 %v1007_v39 }
  0x28   :  { %928 = vmatpush3.bf16.msra.mxu0 %v1004_v37 }
  0x29   :  { %958 = vmatpush3.bf16.msra.mxu1 %v1004_v37  ;;  %929 = vmatprep.subr.bf16.mxu0 %v1011_v41 }
  0x2a   :  { %951 = vmatprep.subr.bf16.mxu1 %v1011_v41 }
  0x2b   :  { %511 = vmatmul.mubr.bf16.gmra.mxu0 %v1009_v40 }
  0x2c   :  { %576 = vmatmul.mubr.bf16.gmra.mxu1 %v1010_v42  ;;  %518 = vmatprep.mubr.bf16.mxu0 %v1013_v43 }
  0x2d   :  { %930 = vmatpush3.bf16.msra.mxu0 %v1011_v41  ;;  %583 = vmatprep.mubr.bf16.mxu1 %v1015_v45 }
  0x2e   :  { %959 = vmatpush3.bf16.msra.mxu1 %v1011_v41  ;;  %931 = vmatprep.subr.bf16.mxu0 %v1012_v44 }
  0x2f   :  { %952 = vmatprep.subr.bf16.mxu1 %v1012_v44 }
  0x31   :  { %932 = vmatpush3.bf16.msra.mxu0 %v1012_v44 }
  0x32   :  { %960 = vmatpush3.bf16.msra.mxu1 %v1012_v44  ;;  %933 = vmatprep.subr.bf16.mxu0 %v1019_v46 }
  0x33   :  { %519 = vmatmul.mubr.bf16.gmra.mxu0 %v1017_v47  ;;  %953 = vmatprep.subr.bf16.mxu1 %v1019_v46 }
  0x34   :  { %584 = vmatmul.mubr.bf16.gmra.mxu1 %v1018_v48  ;;  %526 = vmatprep.mubr.bf16.mxu0 %v1021_v49 }
  0x35   :  { %934 = vmatpush3.bf16.msra.mxu0 %v1019_v46  ;;  %591 = vmatprep.mubr.bf16.mxu1 %v1023_v50 }
  0x36   :  { %961 = vmatpush3.bf16.msra.mxu1 %v1019_v46  ;;  %935 = vmatprep.subr.bf16.mxu0 %v1020_v51 }
  0x37   :  { %954 = vmatprep.subr.bf16.mxu1 %v1020_v51 }
  0x39   :  { %936 = vmatpush3.bf16.msra.mxu0 %v1020_v51 }
  0x3a   :  { %962 = vmatpush3.bf16.msra.mxu1 %v1020_v51  ;;  %937 = vmatprep.subr.bf16.mxu0 %v1027_v52 }
  0x3b   :  { %527 = vmatmul.mubr.bf16.gmra.mxu0 %v1025_v53  ;;  %955 = vmatprep.subr.bf16.mxu1 %v1027_v52 }
  0x3c   :  { %592 = vmatmul.mubr.bf16.gmra.mxu1 %v1026_v54  ;;  %941 = vmatprep.mubr.bf16.mxu0 %v1029_v55 }
  0x3d   :  { %938 = vmatpush3.bf16.msra.mxu0 %v1027_v52  ;;  %945 = vmatprep.mubr.bf16.mxu1 %v1030_v56 }
  0x3e   :  { %963 = vmatpush3.bf16.msra.mxu1 %v1027_v52  ;;  %939 = vmatprep.subr.bf16.mxu0 %v1028_v57 }
  0x3f   :  { %956 = vmatprep.subr.bf16.mxu1 %v1028_v57 }
  0x41   :  { %940 = vmatpush3.bf16.msra.mxu0 %v1028_v57 }
  0x42   :  { %964 = vmatpush3.bf16.msra.mxu1 %v1028_v57 }
  0x44   :  { %942 = vmatmul.mubr.bf16.vlgmr.msra.gmra.mxu0 %v1031_v58 }
  0x45   :  { %946 = vmatmul.mubr.bf16.vlgmr.msra.gmra.mxu1 %v1032_v59 }
  0xe3   :  { %v849_v60 = vpop.f32.mrf.mxu0 }
  0xe4   :  { %v889_v61 = vpop.f32.mrf.mxu1 }
  0xe5   :  { %v850_v62 = vpop.f32.mrf.mxu0 }
  0xe6   :  { %v890_v63 = vpop.f32.mrf.mxu1  ;;  %v851_v20 = vadd.f32 %v850_v62, %v849_v60 }
  0xe7   :  { %v852_v0 = vpop.f32.mrf.mxu0  ;;  %v891_v36 = vadd.f32 %v890_v63, %v889_v61 }
  0xe8   :  { %v892_v1 = vpop.f32.mrf.mxu1  ;;  %v505_v30 = vadd.f32 %v851_v20, %v733_v23 }
  0xe9   :  { %v853_v2 = vpop.f32.mrf.mxu0 }
  0xea   :  { %v893_v3 = vpop.f32.mrf.mxu1  ;;  %v854_v37 = vadd.f32 %v853_v2, %v852_v0  ;;  %v570_v47 = vadd.f32 %v891_v36, %v505_v30 }
  0xeb   :  { %v855_v4 = vpop.f32.mrf.mxu0  ;;  %v894_v54 = vadd.f32 %v893_v3, %v892_v1 }
  0xec   :  { %v895_v5 = vpop.f32.mrf.mxu1  ;;  %v508_v53 = vadd.f32 %v854_v37, %v733_v23 }
  0xed   :  { %v856_v6 = vpop.f32.mrf.mxu0 }
  0xee   :  { %v896_v7 = vpop.f32.mrf.mxu1  ;;  %v857_v21 = vadd.f32 %v856_v6, %v855_v4  ;;  %v573_v1 = vadd.f32 %v894_v54, %v508_v53 }
  0xef   :  { %v858_v8 = vpop.f32.mrf.mxu0  ;;  %v897_v38 = vadd.f32 %v896_v7, %v895_v5 }
  0xf0   :  { %v898_v9 = vpop.f32.mrf.mxu1  ;;  %v513_v31 = vadd.f32 %v857_v21, %v733_v23 }
  0xf1   :  { %v859_v10 = vpop.f32.mrf.mxu0 }
  0xf2   :  { %v899_v11 = vpop.f32.mrf.mxu1  ;;  %v860_v26 = vadd.f32 %v859_v10, %v858_v8  ;;  %v578_v46 = vadd.f32 %v897_v38, %v513_v31 }
  0xf3   :  { %v861_v12 = vpop.f32.mrf.mxu0  ;;  %v900_v48 = vadd.f32 %v899_v11, %v898_v9 }
  0xf4   :  { %v901_v13 = vpop.f32.mrf.mxu1  ;;  %v516_v41 = vadd.f32 %v860_v26, %v733_v23 }
  0xf5   :  { %v862_v14 = vpop.f32.mrf.mxu0 }
  0xf6   :  { %v902_v15 = vpop.f32.mrf.mxu1  ;;  %v863_v27 = vadd.f32 %v862_v14, %v861_v12  ;;  %v581_v61 = vadd.f32 %v900_v48, %v516_v41 }
  0xf7   :  { %v864_v16 = vpop.f32.mrf.mxu0  ;;  %v903_v49 = vadd.f32 %v902_v15, %v901_v13 }
  0xf8   :  { %v904_v17 = vpop.f32.mrf.mxu1  ;;  %v521_v42 = vadd.f32 %v863_v27, %v733_v23 }
  0xf9   :  { %v865_v18 = vpop.f32.mrf.mxu0 }
  0xfa   :  { %v905_v19 = vpop.f32.mrf.mxu1  ;;  %v866_v39 = vadd.f32 %v865_v18, %v864_v16  ;;  %v586_v60 = vadd.f32 %v903_v49, %v521_v42 }
  0xfb   :  { %v867_v22 = vpop.f32.mrf.mxu0  ;;  %v906_v63 = vadd.f32 %v905_v19, %v904_v17 }
  0xfc   :  { %v907_v24 = vpop.f32.mrf.mxu1  ;;  %v524_v55 = vadd.f32 %v866_v39, %v733_v23 }
  0xfd   :  { %v868_v25 = vpop.f32.mrf.mxu0 }
  0xfe   :  { %v869_v28 = vadd.f32 %v868_v25, %v867_v22  ;;  %v908_v29 = vpop.f32.mrf.mxu1  ;;  %v589_v3 = vadd.f32 %v906_v63, %v524_v55 }
  0xff   :  { %v870_v32 = vpop.f32.mrf.mxu0  ;;  %v909_v34 = vadd.f32 %v908_v29, %v907_v24 }
 0x100   :  { %v529_v33 = vadd.f32 %v869_v28, %v733_v23  ;;  %v910_v35 = vpop.f32.mrf.mxu1 }
 0x101   :  { %v871_v40 = vpop.f32.mrf.mxu0 }
 0x102   :  { %v872_v43 = vadd.f32 %v871_v40, %v870_v32  ;;  %v911_v44 = vpop.f32.mrf.mxu1  ;;  %v594_v45 = vadd.f32 %v909_v34, %v529_v33 }
 0x103   :  { %v912_v51 = vadd.f32 %v911_v44, %v910_v35 }
 0x104   :  { %v532_v50 = vadd.f32 %v872_v43, %v733_v23  ;;  %v943_v52 = vpop.f32.mrf.mxu0 }
 0x105   :  { %v643_v56 = vadd.f32 %v943_v52, %v578_v46  ;;  %v947_v57 = vpop.f32.mrf.mxu1 }
 0x106   :  { %v659_v58 = vadd.f32 %v947_v57, %v594_v45  ;;  %v634_v59 = vpop.f32.mrf.mxu0  ;;  %v597_v62 = vadd.f32 %v912_v51, %v532_v50 }
 0x107   :  { %vm667_vm0 = vcmp.gt.f32.partialorder %v643_v56, 0.0  ;;  %v675_v0 = vmul.f32 0.01, %v643_v56  ;;  %v635_v2 = vadd.f32 %v634_v59, %v570_v47  ;;  %v650_v4 = vpop.f32.mrf.mxu1 }
 0x108   :  { %vm671_vm1 = vcmp.gt.f32.partialorder %v659_v58, 0.0  ;;  %v679_v5 = vmul.f32 0.01, %v659_v58  ;;  %v651_v6 = vadd.f32 %v650_v4, %v586_v60  ;;  %v944_v7 = vpop.f32.mrf.mxu0 }
 0x109   :  { %v646_v8 = vadd.f32 %v944_v7, %v581_v61  ;;  %v948_v9 = vpop.f32.mrf.mxu1  ;;  %v683_v10 = vsel %vm667_vm0, %v643_v56, %v675_v0  ;;  %vm665_vm2 = vcmp.gt.f32.partialorder %v635_v2, 0.0  ;;  %v673_v11 = vmul.f32 0.01, %v635_v2 }
 0x10a   :  { %v662_v12 = vadd.f32 %v948_v9, %v597_v62  ;;  %v637_v13 = vpop.f32.mrf.mxu0  ;;  %v687_v14 = vsel %vm671_vm1, %v659_v58, %v679_v5  ;;  %v677_v18 = vmul.f32 0.01, %v651_v6  ;;  %vm669_vm5 = vcmp.gt.f32.partialorder %v651_v6, 0.0 }
 0x10b   :  { %vm668_vm3 = vcmp.gt.f32.partialorder %v646_v8, 0.0  ;;  %v676_v15 = vmul.f32 0.01, %v646_v8  ;;  %v638_v16 = vadd.f32 %v637_v13, %v573_v1  ;;  %v653_v17 = vpop.f32.mrf.mxu1  ;;  %v681_v26 = vsel %vm665_vm2, %v635_v2, %v673_v11 }
 0x10c   :  { %vm672_vm4 = vcmp.gt.f32.partialorder %v662_v12, 0.0  ;;  %v680_v19 = vmul.f32 0.01, %v662_v12  ;;  %v654_v20 = vadd.f32 %v653_v17, %v589_v3  ;;  %v685_v29 = vsel %vm669_vm5, %v651_v6, %v677_v18 }
 0x10d   :  { %v684_v21 = vsel %vm668_vm3, %v646_v8, %v676_v15  ;;  %vm666_vm6 = vcmp.gt.f32.partialorder %v638_v16, 0.0  ;;  %v674_v22 = vmul.f32 0.01, %v638_v16 }
 0x10e   :  { %v818_v23 = vpack.c.bf16 %v684_v21, %v683_v10  ;;  %v688_v24 = vsel %vm672_vm4, %v662_v12, %v680_v19  ;;  %vm670_vm7 = vcmp.gt.f32.partialorder %v654_v20, 0.0  ;;  %v678_v25 = vmul.f32 0.01, %v654_v20 }
 0x10f   :  { %v828_v27 = vpack.c.bf16 %v688_v24, %v687_v14  ;;  %v682_v28 = vsel %vm666_vm6, %v638_v16, %v674_v22 }
 0x110   :  { %830 = vst [vmem:[%s1252_s3 + $0x8] sm:$0xff] %v818_v23   ;;  %v813_v30 = vpack.c.bf16 %v682_v28, %v681_v26  ;;  %v686_v31 = vsel %vm670_vm7, %v654_v20, %v678_v25 }
 0x111   :  { %832 = vst [vmem:[%s1252_s3 + $0x18] sm:$0xff] %v828_v27   ;;  %v823_v32 = vpack.c.bf16 %v686_v31, %v685_v29 }
 0x112   :  { %814 = vst [vmem:[%s1252_s3] sm:$0xff] %v813_v30  }
 0x113   :  { %831 = vst [vmem:[%s1252_s3 + $0x10] sm:$0xff] %v823_v32  }

// kernel: complex_cnn_forward.5
= control target key start
LH: loop header
LB: loop body
LE: loop exit
PB: predicated region body
PF: predicated region fallthrough
CT: control target
= control target key end

     0   :  { %v1763_v50 = vmov 0   ;;  %vm1765_vm14 = vmmov 0   ;;  %s2276_s1 = inlined_call_operand.vmem [shape: bf16[256,128], index: 1, kind: input, shape index: {}]   ;;  %s2277_s0 = inlined_call_operand.vmem [shape: bf16[16,256], index: 0, kind: input, shape index: {}]   ;;  %s2278_s3 = inlined_call_operand.vmem [shape: bf16[128,512], index: 3, kind: input, shape index: {}]   ;;  %s2279_s5 = inlined_call_operand.vmem [shape: bf16[512,256], index: 5, kind: input, shape index: {}]   ;;  %s2280_s2 = inlined_call_operand.vmem [shape: f32[1,128], index: 2, kind: input, shape index: {}]   ;;  %s2281_s7 = inlined_call_operand.vmem [shape: bf16[256,128], index: 7, kind: input, shape index: {}]   ;;  %s2282_s4 = inlined_call_operand.vmem [shape: f32[1,512], index: 4, kind: input, shape index: {}]   ;;  %s2283_s9 = inlined_call_operand.vmem [shape: bf16[128,128], index: 9, kind: input, shape index: {}]   ;;  %s2284_s6 = inlined_call_operand.vmem [shape: f32[1,256], index: 6, kind: input, shape index: {}]   ;;  %s2285_s8 = inlined_call_operand.vmem [shape: f32[1,128], index: 8, kind: input, shape index: {}]   ;;  %s2286_s10 = inlined_call_operand.vmem [shape: f32[1,128], index: 10, kind: input, shape index: {}]   ;;  %s2287_s11 = inlined_call_operand.vmem [shape: f32[16,128], index: 11, kind: output, shape index: {}]  }
   0x1   :  { %v1576_v0 = vld [vmem:[%s2276_s1 + $0x78] sm:$0xff]   ;;  %v1578_v2 = vld [vmem:[%s2276_s1 + $0x70] sm:$0xff]   ;;  %v1580_v4 = vld [vmem:[%s2276_s1 + $0x68] sm:$0xff]   ;;  %480 = vmatprep.mubr.bf16.mxu1 %v1763_v50 }
   0x2   :  { %v1577_v1 = vld [vmem:[%s2276_s1 + $0x38] sm:$0xff]   ;;  %1500 = vmatprep.subr.bf16.mxu0 %v1576_v0  ;;  %v1579_v3 = vld [vmem:[%s2276_s1 + $0x30] sm:$0xff]   ;;  %v1581_v5 = vld [vmem:[%s2276_s1 + $0x28] sm:$0xff]  }
   0x3   :  { %1501 = vmatpush3.bf16.msra.mxu0 %v1577_v1  ;;  %v1582_v6 = vld [vmem:[%s2276_s1 + $0x60] sm:$0xff]   ;;  %v1584_v8 = vld [vmem:[%s2276_s1 + $0x58] sm:$0xff]   ;;  %v1586_v10 = vld [vmem:[%s2276_s1 + $0x50] sm:$0xff]  }
   0x4   :  { %1502 = vmatprep.subr.bf16.mxu0 %v1578_v2  ;;  %v1583_v7 = vld [vmem:[%s2276_s1 + $0x20] sm:$0xff]   ;;  %v1585_v9 = vld [vmem:[%s2276_s1 + $0x18] sm:$0xff]   ;;  %v1587_v13 = vld [vmem:[%s2276_s1 + $0x10] sm:$0xff]  }
   0x5   :  { %v1594_v11 = vld [vmem:[%s2277_s0 + $0x4] ss:$8 sps:$4 sm:$0xff]   ;;  %v1600_v15 = vld [vmem:[%s2278_s3 + $0xe0] ss:$16 sps:$4 sm:$0xff]   ;;  %v1597_v27 = vld [vmem:[%s2278_s3 + $0xe8] ss:$16 sps:$4 sm:$0xff]  }
   0x6   :  { %v1595_v12 = vld [vmem:[%s2278_s3 + $0xe4] ss:$16 sps:$4 sm:$0xff]   ;;  %v1588_v14 = vld [vmem:[%s2276_s1 + $0x48] sm:$0xff]   ;;  %218 = vmatprep.mubr.bf16.mxu0 %v1594_v11  ;;  %v1606_v18 = vld [vmem:[%s2278_s3 + $0xc0] ss:$16 sps:$4 sm:$0xff]  }
   0x7   :  { %1503 = vmatpush3.bf16.msra.mxu0 %v1579_v3  ;;  %448 = vmatprep.subr.bf16.mxu1 %v1595_v12  ;;  %v1601_v16 = vld [vmem:[%s2278_s3 + $0xc4] ss:$16 sps:$4 sm:$0xff]   ;;  %v1589_v17 = vld [vmem:[%s2276_s1 + $0x8] sm:$0xff]   ;;  %v1612_v21 = vld [vmem:[%s2278_s3 + $0xa0] ss:$16 sps:$4 sm:$0xff]  }
   0x8   :  { %1504 = vmatprep.subr.bf16.mxu0 %v1580_v4  ;;  %449 = vmatpush1.bf16.msra.mxu1 %v1600_v15  ;;  %v1607_v19 = vld [vmem:[%s2278_s3 + $0xa4] ss:$16 sps:$4 sm:$0xff]   ;;  %v1599_v24 = vld [vmem:[%s2278_s3 + $0xec] ss:$16 sps:$4 sm:$0xff]   ;;  %v1618_v25 = vld [vmem:[%s2278_s3 + $0x80] ss:$16 sps:$4 sm:$0xff]  }
   0x9   :  { %450 = vmatprep.subr.bf16.mxu1 %v1601_v16  ;;  %v1590_v20 = vld [vmem:[%s2276_s1 + $0x40] sm:$0xff]   ;;  %v1605_v28 = vld [vmem:[%s2278_s3 + $0xcc] ss:$16 sps:$4 sm:$0xff]   ;;  %v1603_v29 = vld [vmem:[%s2278_s3 + $0xc8] ss:$16 sps:$4 sm:$0xff]  }
   0xa   :  { %v1613_v22 = vld [vmem:[%s2278_s3 + $0x84] ss:$16 sps:$4 sm:$0xff]   ;;  %v1592_v26 = vld [vmem:[%s2277_s0] ss:$8 sps:$4 sm:$0xff]   ;;  %v1611_v30 = vld [vmem:[%s2278_s3 + $0xac] ss:$16 sps:$4 sm:$0xff]  }
   0xb   :  { %1505 = vmatpush3.bf16.msra.mxu0 %v1581_v5  ;;  %v1591_v23 = vld [vmem:[%s2276_s1] sm:$0xff]   ;;  %v1609_v31 = vld [vmem:[%s2278_s3 + $0xa8] ss:$16 sps:$4 sm:$0xff]   ;;  %v1617_v32 = vld [vmem:[%s2278_s3 + $0x8c] ss:$16 sps:$4 sm:$0xff]  }
   0xc   :  { %1506 = vmatprep.subr.bf16.mxu0 %v1582_v6  ;;  %451 = vmatpush1.bf16.msra.mxu1 %v1606_v18  ;;  %v1615_v33 = vld [vmem:[%s2278_s3 + $0x88] ss:$16 sps:$4 sm:$0xff]   ;;  %v1619_v34 = vld [vmem:[%s2278_s3 + $0x64] ss:$16 sps:$4 sm:$0xff]   ;;  %v1623_v35 = vld [vmem:[%s2278_s3 + $0x6c] ss:$16 sps:$4 sm:$0xff]  }
   0xd   :  { %452 = vmatprep.subr.bf16.mxu1 %v1607_v19  ;;  %v1621_v36 = vld [vmem:[%s2278_s3 + $0x68] ss:$16 sps:$4 sm:$0xff]   ;;  %v1624_v37 = vld [vmem:[%s2278_s3 + $0x60] ss:$16 sps:$4 sm:$0xff]   ;;  %v1625_v38 = vld [vmem:[%s2278_s3 + $0x44] ss:$16 sps:$4 sm:$0xff]  }
   0xe   :  { %v1629_v39 = vld [vmem:[%s2278_s3 + $0x4c] ss:$16 sps:$4 sm:$0xff]   ;;  %v1627_v40 = vld [vmem:[%s2278_s3 + $0x48] ss:$16 sps:$4 sm:$0xff]   ;;  %v1630_v41 = vld [vmem:[%s2278_s3 + $0x40] ss:$16 sps:$4 sm:$0xff]  }
   0xf   :  { %1507 = vmatpush3.bf16.msra.mxu0 %v1583_v7  ;;  %v1631_v42 = vld [vmem:[%s2278_s3 + $0x24] ss:$16 sps:$4 sm:$0xff]   ;;  %v1635_v43 = vld [vmem:[%s2278_s3 + $0x2c] ss:$16 sps:$4 sm:$0xff]   ;;  %v1633_v44 = vld [vmem:[%s2278_s3 + $0x28] ss:$16 sps:$4 sm:$0xff]  }
  0x10   :  { %1508 = vmatprep.subr.bf16.mxu0 %v1584_v8  ;;  %453 = vmatpush1.bf16.msra.mxu1 %v1612_v21  ;;  %v1636_v45 = vld [vmem:[%s2278_s3 + $0x20] ss:$16 sps:$4 sm:$0xff]   ;;  %v1637_v46 = vld [vmem:[%s2278_s3 + $0x4] ss:$16 sps:$4 sm:$0xff]   ;;  %v1641_v47 = vld [vmem:[%s2278_s3 + $0xc] ss:$16 sps:$4 sm:$0xff]  }
  0x11   :  { %454 = vmatprep.subr.bf16.mxu1 %v1613_v22  ;;  %v1639_v48 = vld [vmem:[%s2278_s3 + $0x8] ss:$16 sps:$4 sm:$0xff]   ;;  %v1642_v49 = vld [vmem:[%s2278_s3] ss:$16 sps:$4 sm:$0xff]   ;;  %v1645_v51 = vld [vmem:[%s2279_s5 + $0x74] ss:$8 sps:$4 sm:$0xff]  }
  0x12   :  { %v1648_v52 = vld [vmem:[%s2279_s5 + $0x174] ss:$8 sps:$4 sm:$0xff]   ;;  %v1359_v54 = vld [vmem:[%s2280_s2] ss:$0 sm:$0xff]  ;;  %v1643_v2 = vld [vmem:[%s2279_s5 + $0x70] ss:$8 sps:$4 sm:$0xff]  }
  0x13   :  { %1509 = vmatpush3.bf16.msra.mxu0 %v1585_v9  ;;  %v1646_v3 = vld [vmem:[%s2279_s5 + $0x170] ss:$8 sps:$4 sm:$0xff]   ;;  %v1651_v5 = vld [vmem:[%s2279_s5 + $0x64] ss:$8 sps:$4 sm:$0xff]   ;;  %v1649_v7 = vld [vmem:[%s2279_s5 + $0x60] ss:$8 sps:$4 sm:$0xff]  }
  0x14   :  { %1510 = vmatprep.subr.bf16.mxu0 %v1586_v10  ;;  %455 = vmatpush1.bf16.msra.mxu1 %v1618_v25  ;;  %v1654_v6 = vld [vmem:[%s2279_s5 + $0x164] ss:$8 sps:$4 sm:$0xff]   ;;  %v1652_v8 = vld [vmem:[%s2279_s5 + $0x160] ss:$8 sps:$4 sm:$0xff]   ;;  %v1657_v9 = vld [vmem:[%s2279_s5 + $0x54] ss:$8 sps:$4 sm:$0xff]  }
  0x15   :  { %456 = vmatprep.subr.bf16.mxu1 %v1619_v34  ;;  %v1660_v10 = vld [vmem:[%s2279_s5 + $0x154] ss:$8 sps:$4 sm:$0xff]   ;;  %v1655_v11 = vld [vmem:[%s2279_s5 + $0x50] ss:$8 sps:$4 sm:$0xff]   ;;  %v1661_v15 = vld [vmem:[%s2279_s5 + $0x40] ss:$8 sps:$4 sm:$0xff]  }
  0x16   :  { %v1658_v12 = vld [vmem:[%s2279_s5 + $0x150] ss:$8 sps:$4 sm:$0xff]   ;;  %v1664_v16 = vld [vmem:[%s2279_s5 + $0x140] ss:$8 sps:$4 sm:$0xff]   ;;  %v1672_v18 = vld [vmem:[%s2279_s5 + $0x134] ss:$8 sps:$4 sm:$0xff]  }
  0x17   :  { %1511 = vmatpush3.bf16.msra.mxu0 %v1587_v13  ;;  %v1663_v13 = vld [vmem:[%s2279_s5 + $0x44] ss:$8 sps:$4 sm:$0xff]   ;;  %v1667_v19 = vld [vmem:[%s2279_s5 + $0x30] ss:$8 sps:$4 sm:$0xff]   ;;  %v1681_v25 = vld [vmem:[%s2279_s5 + $0x14] ss:$8 sps:$4 sm:$0xff]  }
  0x18   :  { %1512 = vmatprep.subr.bf16.mxu0 %v1588_v14  ;;  %457 = vmatpush1.bf16.msra.mxu1 %v1624_v37  ;;  %v1666_v14 = vld [vmem:[%s2279_s5 + $0x144] ss:$8 sps:$4 sm:$0xff]   ;;  %v1696_v34 = vld [vmem:[%s2279_s5 + $0x1f4] ss:$8 sps:$4 sm:$0xff]  }
  0x19   :  { %458 = vmatprep.subr.bf16.mxu1 %v1625_v38  ;;  %v1675_v21 = vld [vmem:[%s2279_s5 + $0x24] ss:$8 sps:$4 sm:$0xff]  }
  0x1a   :  { %v1678_v22 = vld [vmem:[%s2279_s5 + $0x124] ss:$8 sps:$4 sm:$0xff]  }
  0x1b   :  { %1513 = vmatpush3.bf16.msra.mxu0 %v1589_v17  ;;  %v1669_v17 = vld [vmem:[%s2279_s5 + $0x34] ss:$8 sps:$4 sm:$0xff]   ;;  %v1699_v37 = vld [vmem:[%s2279_s5 + $0xe4] ss:$8 sps:$4 sm:$0xff]  }
  0x1c   :  { %1514 = vmatprep.subr.bf16.mxu0 %v1590_v20  ;;  %459 = vmatpush1.bf16.msra.mxu1 %v1630_v41  ;;  %v1670_v20 = vld [vmem:[%s2279_s5 + $0x130] ss:$8 sps:$4 sm:$0xff]   ;;  %v1702_v38 = vld [vmem:[%s2279_s5 + $0x1e4] ss:$8 sps:$4 sm:$0xff]   ;;  %v1705_v41 = vld [vmem:[%s2279_s5 + $0xd4] ss:$8 sps:$4 sm:$0xff]  }
  0x1d   :  { %460 = vmatprep.subr.bf16.mxu1 %v1631_v42  ;;  %v1708_v42 = vld [vmem:[%s2279_s5 + $0x1d4] ss:$8 sps:$4 sm:$0xff]  }
  0x1f   :  { %1515 = vmatpush3.bf16.msra.mxu0 %v1591_v23  ;;  %v1673_v23 = vld [vmem:[%s2279_s5 + $0x20] ss:$8 sps:$4 sm:$0xff]  }
  0x20   :  { %491 = vmatprep.subr.bf16.mxu0 %v1599_v24  ;;  %461 = vmatpush1.bf16.msra.mxu1 %v1636_v45  ;;  %v1676_v24 = vld [vmem:[%s2279_s5 + $0x120] ss:$8 sps:$4 sm:$0xff]   ;;  %v1711_v45 = vld [vmem:[%s2279_s5 + $0xc4] ss:$8 sps:$4 sm:$0xff]  }
  0x21   :  { %462 = vmatprep.subr.bf16.mxu1 %v1637_v46  ;;  %v1714_v46 = vld [vmem:[%s2279_s5 + $0x1c4] ss:$8 sps:$4 sm:$0xff]  }
  0x22   :  { %219 = vmatmul.mubr.bf16.vlgmr.msra.gmra.mxu0 %v1592_v26  ;;  %v1684_v26 = vld [vmem:[%s2279_s5 + $0x114] ss:$8 sps:$4 sm:$0xff]  }
  0x23   :  { %492 = vmatpush1.bf16.msra.mxu0 %v1597_v27  ;;  %523 = vmatprep.mubr.bf16.mxu0 %v1763_v50  ;;  %v1679_v27 = vld [vmem:[%s2279_s5 + $0x10] ss:$8 sps:$4 sm:$0xff]   ;;  %v1720_v50 = vld [vmem:[%s2279_s5 + $0x1b4] ss:$8 sps:$4 sm:$0xff]  }
  0x24   :  { %493 = vmatprep.subr.bf16.mxu0 %v1605_v28  ;;  %463 = vmatpush1.bf16.msra.mxu1 %v1642_v49  ;;  %v1682_v28 = vld [vmem:[%s2279_s5 + $0x110] ss:$8 sps:$4 sm:$0xff]   ;;  %v1717_v49 = vld [vmem:[%s2279_s5 + $0xb4] ss:$8 sps:$4 sm:$0xff]  }
  0x25   :  { %958 = vmatprep.subr.bf16.mxu1 %v1645_v51  ;;  %v1715_v51 = vld [vmem:[%s2279_s5 + $0xb0] ss:$8 sps:$4 sm:$0xff]  }
  0x27   :  { %494 = vmatpush1.bf16.msra.mxu0 %v1603_v29  ;;  %v1687_v29 = vld [vmem:[%s2279_s5 + $0x4] ss:$8 sps:$4 sm:$0xff]  }
  0x28   :  { %495 = vmatprep.subr.bf16.mxu0 %v1611_v30  ;;  %v1690_v30 = vld [vmem:[%s2279_s5 + $0x104] ss:$8 sps:$4 sm:$0xff]  }
  0x2b   :  { %496 = vmatpush1.bf16.msra.mxu0 %v1609_v31  ;;  %v1685_v31 = vld [vmem:[%s2279_s5] ss:$8 sps:$4 sm:$0xff]  }
  0x2c   :  { %497 = vmatprep.subr.bf16.mxu0 %v1617_v32  ;;  %v1688_v32 = vld [vmem:[%s2279_s5 + $0x100] ss:$8 sps:$4 sm:$0xff]  }
  0x2f   :  { %498 = vmatpush1.bf16.msra.mxu0 %v1615_v33  ;;  %v1693_v33 = vld [vmem:[%s2279_s5 + $0xf4] ss:$8 sps:$4 sm:$0xff]  }
  0x30   :  { %499 = vmatprep.subr.bf16.mxu0 %v1623_v35  ;;  %v1691_v35 = vld [vmem:[%s2279_s5 + $0xf0] ss:$8 sps:$4 sm:$0xff]  }
  0x33   :  { %500 = vmatpush1.bf16.msra.mxu0 %v1621_v36  ;;  %v1694_v36 = vld [vmem:[%s2279_s5 + $0x1f0] ss:$8 sps:$4 sm:$0xff]  }
  0x34   :  { %501 = vmatprep.subr.bf16.mxu0 %v1629_v39  ;;  %v1697_v39 = vld [vmem:[%s2279_s5 + $0xe0] ss:$8 sps:$4 sm:$0xff]  }
  0x37   :  { %502 = vmatpush1.bf16.msra.mxu0 %v1627_v40  ;;  %v1700_v40 = vld [vmem:[%s2279_s5 + $0x1e0] ss:$8 sps:$4 sm:$0xff]  }
  0x38   :  { %503 = vmatprep.subr.bf16.mxu0 %v1635_v43  ;;  %v1703_v43 = vld [vmem:[%s2279_s5 + $0xd0] ss:$8 sps:$4 sm:$0xff]  }
  0x3b   :  { %504 = vmatpush1.bf16.msra.mxu0 %v1633_v44  ;;  %v1706_v44 = vld [vmem:[%s2279_s5 + $0x1d0] ss:$8 sps:$4 sm:$0xff]  }
  0x3c   :  { %505 = vmatprep.subr.bf16.mxu0 %v1641_v47  ;;  %v1709_v47 = vld [vmem:[%s2279_s5 + $0xc0] ss:$8 sps:$4 sm:$0xff]  }
  0x3f   :  { %506 = vmatpush1.bf16.msra.mxu0 %v1639_v48  ;;  %v1712_v48 = vld [vmem:[%s2279_s5 + $0x1c0] ss:$8 sps:$4 sm:$0xff]  }
  0x40   :  { %1001 = vmatprep.subr.bf16.mxu0 %v1648_v52  ;;  %v1718_v52 = vld [vmem:[%s2279_s5 + $0x1b0] ss:$8 sps:$4 sm:$0xff]  }
  0xe2   :  { %v1516_v53 = vpop.f32.mrf.mxu0 }
  0xe4   :  { %v1517_v55 = vpop.f32.mrf.mxu0 }
  0xe5   :  { %v1518_v56 = vadd.f32 %v1517_v55, %v1516_v53  ;;  %v1723_v53 = vld [vmem:[%s2279_s5 + $0xa4] ss:$8 sps:$4 sm:$0xff]   ;;  %v1721_v55 = vld [vmem:[%s2279_s5 + $0xa0] ss:$8 sps:$4 sm:$0xff]  }
  0xe6   :  { %v1519_v57 = vpop.f32.mrf.mxu0 }
  0xe7   :  { %v221_v58 = vadd.f32 %v1518_v56, %v1359_v54  ;;  %v1724_v56 = vld [vmem:[%s2279_s5 + $0x1a0] ss:$8 sps:$4 sm:$0xff]  }
  0xe8   :  { %v1520_v59 = vpop.f32.mrf.mxu0 }
  0xe9   :  { %v1521_v60 = vadd.f32 %v1520_v59, %v1519_v57  ;;  %v229_v61 = vmul.f32 0.01, %v221_v58  ;;  %vm227_vm0 = vcmp.gt.f32.partialorder %v221_v58, 0.0  ;;  %v1729_v57 = vld [vmem:[%s2279_s5 + $0x94] ss:$8 sps:$4 sm:$0xff]  }
  0xea   :  { %v1727_v59 = vld [vmem:[%s2279_s5 + $0x90] ss:$8 sps:$4 sm:$0xff]  }
  0xeb   :  { %v224_v62 = vadd.f32 %v1521_v60, %v1359_v54  ;;  %v231_v0 = vsel %vm227_vm0, %v221_v58, %v229_v61  ;;  %v1726_v54 = vld [vmem:[%s2279_s5 + $0x1a4] ss:$8 sps:$4 sm:$0xff]   ;;  %v1732_v58 = vld [vmem:[%s2279_s5 + $0x194] ss:$8 sps:$4 sm:$0xff]   ;;  %v1730_v60 = vld [vmem:[%s2279_s5 + $0x190] ss:$8 sps:$4 sm:$0xff]  }
  0xec   :  { %v1733_v61 = vld [vmem:[%s2279_s5 + $0x80] ss:$8 sps:$4 sm:$0xff]  }
  0xed   :  { %vm228_vm1 = vcmp.gt.f32.partialorder %v224_v62, 0.0  ;;  %v230_v63 = vmul.f32 0.01, %v224_v62 }
  0xef   :  { %v232_v1 = vsel %vm228_vm1, %v224_v62, %v230_v63  ;;  %v1735_v62 = vld [vmem:[%s2279_s5 + $0x84] ss:$8 sps:$4 sm:$0xff]   ;;  %v1736_v63 = vld [vmem:[%s2279_s5 + $0x180] ss:$8 sps:$4 sm:$0xff]  }
  0xf0   :  { %v233_v4 = vpack.c.bf16 %v232_v1, %v231_v0  ;;  %v1738_v0 = vld [vmem:[%s2279_s5 + $0x184] ss:$8 sps:$4 sm:$0xff]   ;;  %v1739_v1 = vld [vmem:[%s2281_s7 + $0x78] sm:$0xff]  }
  0xf2   :  { %481 = vmatmul.mubr.bf16.vlgmr.msra.gmra.mxu1 %v233_v4  ;;  %524 = vmatmul.mubr.bf16.vlgmr.msra.gmra.mxu0 %v233_v4 }
  0xf3   :  { %959 = vmatpush1.bf16.msra.mxu1 %v1643_v2  ;;  %1002 = vmatpush1.bf16.msra.mxu0 %v1646_v3  ;;  %v268_v2 = vlaneseq }
  0xf4   :  { %960 = vmatprep.subr.bf16.mxu1 %v1651_v5  ;;  %1003 = vmatprep.subr.bf16.mxu0 %v1654_v6  ;;  %v266_v5 = vld [vmem:[%s2282_s4] sm:$0xf] }
  0xf5   :  { %v2174_v3 = vshrl.u32 %v268_v2, 7  ;;  %v1756_v2 = vld [vmem:[%s2283_s9 + $0x30] sm:$0xff]  }
  0xf7   :  { %961 = vmatpush1.bf16.msra.mxu1 %v1649_v7  ;;  %1004 = vmatpush1.bf16.msra.mxu0 %v1652_v8  ;;  %v270_v4 = vsub.s32 0, %v2174_v3  ;;  %v274_v6 = vsub.s32 1, %v2174_v3  ;;  %v282_v7 = vsub.s32 3, %v2174_v3  ;;  %v278_v8 = vsub.s32 2, %v2174_v3 }
  0xf8   :  { %962 = vmatprep.subr.bf16.mxu1 %v1657_v9  ;;  %1005 = vmatprep.subr.bf16.mxu0 %v1660_v10 }
  0xf9   :  { %v271_v9 = vrot.slane %v266_v5, %v270_v4 }
  0xfb   :  { %963 = vmatpush1.bf16.msra.mxu1 %v1655_v11  ;;  %1006 = vmatpush1.bf16.msra.mxu0 %v1658_v12  ;;  %v275_v12 = vrot.slane %v266_v5, %v274_v6 }
  0xfc   :  { %964 = vmatprep.subr.bf16.mxu1 %v1663_v13  ;;  %1007 = vmatprep.subr.bf16.mxu0 %v1666_v14  ;;  %v283_v13 = vrot.slane %v266_v5, %v282_v7  ;;  %v279_v14 = vrot.slane %v266_v5, %v278_v8  ;;  %v1757_v5 = vld [vmem:[%s2283_s9 + $0x28] sm:$0xff]   ;;  %v1758_v7 = vld [vmem:[%s2283_s9 + $0x20] sm:$0xff]  }
  0xfd   :  { %v626_v8 = vld [vmem:[%s2284_s6] sm:$0x3] }
  0xff   :  { %965 = vmatpush1.bf16.msra.mxu1 %v1661_v15  ;;  %1008 = vmatpush1.bf16.msra.mxu0 %v1664_v16 }
 0x100   :  { %966 = vmatprep.subr.bf16.mxu1 %v1669_v17  ;;  %1009 = vmatprep.subr.bf16.mxu0 %v1672_v18 }
 0x103   :  { %967 = vmatpush1.bf16.msra.mxu1 %v1667_v19  ;;  %1010 = vmatpush1.bf16.msra.mxu0 %v1670_v20 }
 0x104   :  { %968 = vmatprep.subr.bf16.mxu1 %v1675_v21  ;;  %1011 = vmatprep.subr.bf16.mxu0 %v1678_v22 }
 0x107   :  { %969 = vmatpush1.bf16.msra.mxu1 %v1673_v23  ;;  %1012 = vmatpush1.bf16.msra.mxu0 %v1676_v24 }
 0x108   :  { %970 = vmatprep.subr.bf16.mxu1 %v1681_v25  ;;  %1013 = vmatprep.subr.bf16.mxu0 %v1684_v26 }
 0x10b   :  { %971 = vmatpush1.bf16.msra.mxu1 %v1679_v27  ;;  %1014 = vmatpush1.bf16.msra.mxu0 %v1682_v28 }
 0x10c   :  { %972 = vmatprep.subr.bf16.mxu1 %v1687_v29  ;;  %1015 = vmatprep.subr.bf16.mxu0 %v1690_v30 }
 0x10f   :  { %973 = vmatpush1.bf16.msra.mxu1 %v1685_v31  ;;  %1016 = vmatpush1.bf16.msra.mxu0 %v1688_v32 }
 0x110   :  { %974 = vmatprep.subr.bf16.mxu1 %v1693_v33  ;;  %1017 = vmatprep.subr.bf16.mxu0 %v1696_v34 }
 0x113   :  { %975 = vmatpush2.bf16.msra.mxu1 %v1691_v35  ;;  %1018 = vmatpush2.bf16.msra.mxu0 %v1694_v36 }
 0x114   :  { %976 = vmatprep.subr.bf16.mxu1 %v1699_v37  ;;  %1019 = vmatprep.subr.bf16.mxu0 %v1702_v38 }
 0x117   :  { %977 = vmatpush2.bf16.msra.mxu1 %v1697_v39  ;;  %1020 = vmatpush2.bf16.msra.mxu0 %v1700_v40 }
 0x118   :  { %978 = vmatprep.subr.bf16.mxu1 %v1705_v41  ;;  %1021 = vmatprep.subr.bf16.mxu0 %v1708_v42 }
 0x11b   :  { %979 = vmatpush2.bf16.msra.mxu1 %v1703_v43  ;;  %1022 = vmatpush2.bf16.msra.mxu0 %v1706_v44 }
 0x11c   :  { %980 = vmatprep.subr.bf16.mxu1 %v1711_v45  ;;  %1023 = vmatprep.subr.bf16.mxu0 %v1714_v46  ;;  %v1740_v45 = vld [vmem:[%s2281_s7 + $0x38] sm:$0xff]  }
 0x11f   :  { %981 = vmatpush2.bf16.msra.mxu1 %v1709_v47  ;;  %1024 = vmatpush2.bf16.msra.mxu0 %v1712_v48 }
 0x120   :  { %982 = vmatprep.subr.bf16.mxu1 %v1717_v49  ;;  %1025 = vmatprep.subr.bf16.mxu0 %v1720_v50  ;;  %v1741_v49 = vld [vmem:[%s2281_s7 + $0x70] sm:$0xff]  }
 0x123   :  { %983 = vmatpush2.bf16.msra.mxu1 %v1715_v51  ;;  %1026 = vmatpush2.bf16.msra.mxu0 %v1718_v52  ;;  %v1742_v51 = vld [vmem:[%s2281_s7 + $0x30] sm:$0xff]   ;;  %v1743_v52 = vld [vmem:[%s2281_s7 + $0x68] sm:$0xff]  }
 0x124   :  { %984 = vmatprep.subr.bf16.mxu1 %v1723_v53  ;;  %1027 = vmatprep.subr.bf16.mxu0 %v1726_v54  ;;  %v1744_v53 = vld [vmem:[%s2281_s7 + $0x28] sm:$0xff]   ;;  %v1745_v54 = vld [vmem:[%s2281_s7 + $0x60] sm:$0xff]  }
 0x127   :  { %985 = vmatpush2.bf16.msra.mxu1 %v1721_v55  ;;  %1028 = vmatpush2.bf16.msra.mxu0 %v1724_v56  ;;  %v1746_v55 = vld [vmem:[%s2281_s7 + $0x20] sm:$0xff]   ;;  %v1747_v56 = vld [vmem:[%s2281_s7 + $0x58] sm:$0xff]  }
 0x128   :  { %986 = vmatprep.subr.bf16.mxu1 %v1729_v57  ;;  %1029 = vmatprep.subr.bf16.mxu0 %v1732_v58  ;;  %v1748_v57 = vld [vmem:[%s2281_s7 + $0x18] sm:$0xff]   ;;  %v1749_v58 = vld [vmem:[%s2281_s7 + $0x50] sm:$0xff]  }
 0x12b   :  { %987 = vmatpush2.bf16.msra.mxu1 %v1727_v59  ;;  %1030 = vmatpush2.bf16.msra.mxu0 %v1730_v60  ;;  %v1750_v59 = vld [vmem:[%s2281_s7 + $0x10] sm:$0xff]   ;;  %v1751_v60 = vld [vmem:[%s2281_s7 + $0x48] sm:$0xff]  }
 0x12c   :  { %988 = vmatprep.subr.bf16.mxu1 %v1735_v62  ;;  %1031 = vmatprep.subr.bf16.mxu0 %v1738_v0  ;;  %v1753_v62 = vld [vmem:[%s2281_s7 + $0x40] sm:$0xff]   ;;  %v1764_v0 = vmov 0.0  }
 0x12f   :  { %989 = vmatpush2.bf16.msra.mxu1 %v1733_v61  ;;  %1032 = vmatpush2.bf16.msra.mxu0 %v1736_v63  ;;  %v1752_v61 = vld [vmem:[%s2281_s7 + $0x8] sm:$0xff]   ;;  %v1754_v63 = vld [vmem:[%s2281_s7] sm:$0xff]  }
 0x130   :  { %1522 = vmatprep.subr.bf16.mxu1 %v1739_v1  ;;  %1553 = vmatprep.subr.bf16.mxu0 %v1764_v0  ;;  %v1755_v1 = vld [vmem:[%s2283_s9 + $0x38] sm:$0xff]  }
 0x1b2   :  { %v482_v10 = vpop.f32.mrf.mxu1  ;;  %v525_v11 = vpop.f32.mrf.mxu0 }
 0x1b3   :  { %v483_v17 = vadd.f32 %v482_v10, %v271_v9  ;;  %v526_v24 = vadd.f32 %v525_v11, %v279_v14  ;;  %v635_v10 = vrot.slane %v626_v8, %v274_v6 }
 0x1b4   :  { %v484_v15 = vpop.f32.mrf.mxu1  ;;  %v527_v16 = vpop.f32.mrf.mxu0 }
 0x1b5   :  { %v485_v18 = vadd.f32 %v484_v15, %v275_v12  ;;  %v528_v21 = vadd.f32 %v527_v16, %v283_v13  ;;  %vm534_vm2 = vcmp.gt.f32.partialorder %v483_v17, 0.0  ;;  %v542_v32 = vmul.f32 0.01, %v483_v17 }
 0x1b6   :  { %v486_v19 = vpop.f32.mrf.mxu1  ;;  %v529_v20 = vpop.f32.mrf.mxu0  ;;  %v544_v34 = vmul.f32 0.01, %v526_v24  ;;  %vm536_vm8 = vcmp.gt.f32.partialorder %v526_v24, 0.0 }
 0x1b7   :  { %v487_v22 = vadd.f32 %v486_v19, %v271_v9  ;;  %v530_v23 = vadd.f32 %v529_v20, %v279_v14  ;;  %v543_v27 = vmul.f32 0.01, %v485_v18  ;;  %vm535_vm4 = vcmp.gt.f32.partialorder %v485_v18, 0.0 }
 0x1b8   :  { %v488_v25 = vpop.f32.mrf.mxu1  ;;  %v531_v26 = vpop.f32.mrf.mxu0  ;;  %v545_v33 = vmul.f32 0.01, %v528_v21  ;;  %vm537_vm6 = vcmp.gt.f32.partialorder %v528_v21, 0.0  ;;  %v550_v41 = vsel %vm534_vm2, %v483_v17, %v542_v32  ;;  %v552_v46 = vsel %vm536_vm8, %v526_v24, %v544_v34  ;;  %v1759_v34 = vld [vmem:[%s2283_s9 + $0x18] sm:$0xff]  }
 0x1b9   :  { %v546_v28 = vmul.f32 0.01, %v487_v22  ;;  %vm538_vm3 = vcmp.gt.f32.partialorder %v487_v22, 0.0  ;;  %v548_v29 = vmul.f32 0.01, %v530_v23  ;;  %v489_v30 = vadd.f32 %v488_v25, %v275_v12 }
 0x1ba   :  { %v532_v31 = vadd.f32 %v531_v26, %v283_v13  ;;  %vm540_vm5 = vcmp.gt.f32.partialorder %v530_v23, 0.0  ;;  %v551_v39 = vsel %vm535_vm4, %v485_v18, %v543_v27  ;;  %v553_v43 = vsel %vm537_vm6, %v528_v21, %v545_v33 }
 0x1bb   :  { %vm539_vm7 = vcmp.gt.f32.partialorder %v489_v30, 0.0  ;;  %v547_v35 = vmul.f32 0.01, %v489_v30  ;;  %v554_v36 = vsel %vm538_vm3, %v487_v22, %v546_v28  ;;  %v556_v38 = vsel %vm540_vm5, %v530_v23, %v548_v29 }
 0x1bc   :  { %vm541_vm9 = vcmp.gt.f32.partialorder %v532_v31, 0.0  ;;  %v549_v37 = vmul.f32 0.01, %v532_v31  ;;  %v558_v47 = vpack.c.bf16 %v554_v36, %v550_v41  ;;  %v560_v50 = vpack.c.bf16 %v556_v38, %v552_v46  ;;  %v1761_v36 = vld [vmem:[%s2283_s9 + $0x8] sm:$0xff]  }
 0x1bd   :  { %v555_v40 = vsel %vm539_vm7, %v489_v30, %v547_v35  ;;  %v631_v9 = vrot.slane %v626_v8, %v270_v4  ;;  %v1760_v35 = vld [vmem:[%s2283_s9 + $0x10] sm:$0xff]  }
 0x1be   :  { %v559_v42 = vpack.c.bf16 %v555_v40, %v551_v39  ;;  %v557_v44 = vsel %vm541_vm9, %v532_v31, %v549_v37  ;;  %v1762_v37 = vld [vmem:[%s2283_s9] sm:$0xff]  }
 0x1bf   :  { %v561_v48 = vpack.c.bf16 %v557_v44, %v553_v43  ;;  %v1474_v39 = vld [vmem:[%s2285_s8] ss:$0 sm:$0xff] }
 0x1c0   :  { %990 = vmatprep.mubr.bf16.mxu1 %v559_v42 }
 0x1c1   :  { %1033 = vmatprep.mubr.bf16.mxu0 %v561_v48  ;;  %991 = vmatmul.mubr.bf16.vlgmr.msra.gmra.mxu1 %v558_v47 }
 0x1c2   :  { %1034 = vmatmul.mubr.bf16.vlgmr.msra.gmra.mxu0 %v560_v50  ;;  %1523 = vmatpush3.bf16.msra.mxu1 %v1740_v45 }
 0x1c3   :  { %1524 = vmatprep.subr.bf16.mxu1 %v1741_v49  ;;  %1554 = vmatpush3.bf16.msra.mxu0 %v1755_v1 }
 0x1c4   :  { %1555 = vmatprep.subr.bf16.mxu0 %v1764_v0  ;;  %1569 = vmatprep.mubr.msk.bf16.mxu0 %vm1765_vm14, %v1764_v0 }
 0x1c6   :  { %1525 = vmatpush3.bf16.msra.mxu1 %v1742_v51 }
 0x1c7   :  { %1526 = vmatprep.subr.bf16.mxu1 %v1743_v52  ;;  %1556 = vmatpush3.bf16.msra.mxu0 %v1756_v2  ;;  %v1491_v52 = vld [vmem:[%s2286_s10] ss:$0 sm:$0xff] }
 0x1c8   :  { %1557 = vmatprep.subr.bf16.mxu0 %v1764_v0 }
 0x1ca   :  { %1527 = vmatpush3.bf16.msra.mxu1 %v1744_v53 }
 0x1cb   :  { %1528 = vmatprep.subr.bf16.mxu1 %v1745_v54  ;;  %1558 = vmatpush3.bf16.msra.mxu0 %v1757_v5 }
 0x1cc   :  { %1559 = vmatprep.subr.bf16.mxu0 %v1764_v0 }
 0x1ce   :  { %1529 = vmatpush3.bf16.msra.mxu1 %v1746_v55 }
 0x1cf   :  { %1530 = vmatprep.subr.bf16.mxu1 %v1747_v56  ;;  %1560 = vmatpush3.bf16.msra.mxu0 %v1758_v7 }
 0x1d0   :  { %1561 = vmatprep.subr.bf16.mxu0 %v1764_v0 }
 0x1d2   :  { %1531 = vmatpush3.bf16.msra.mxu1 %v1748_v57 }
 0x1d3   :  { %1532 = vmatprep.subr.bf16.mxu1 %v1749_v58  ;;  %1562 = vmatpush3.bf16.msra.mxu0 %v1759_v34 }
 0x1d4   :  { %1563 = vmatprep.subr.bf16.mxu0 %v1764_v0 }
 0x1d6   :  { %1533 = vmatpush3.bf16.msra.mxu1 %v1750_v59 }
 0x1d7   :  { %1534 = vmatprep.subr.bf16.mxu1 %v1751_v60  ;;  %1564 = vmatpush3.bf16.msra.mxu0 %v1760_v35 }
 0x1d8   :  { %1565 = vmatprep.subr.bf16.mxu0 %v1764_v0 }
 0x1da   :  { %1535 = vmatpush3.bf16.msra.mxu1 %v1752_v61 }
 0x1db   :  { %1536 = vmatprep.subr.bf16.mxu1 %v1753_v62  ;;  %1566 = vmatpush3.bf16.msra.mxu0 %v1761_v36 }
 0x1dc   :  { %1567 = vmatprep.subr.bf16.mxu0 %v1764_v0 }
 0x1de   :  { %1537 = vmatpush3.bf16.msra.mxu1 %v1754_v63 }
 0x1df   :  { %1568 = vmatpush3.bf16.msra.mxu0 %v1762_v37 }
 0x281   :  { %v992_v11 = vpop.f32.mrf.mxu1 }
 0x282   :  { %v1035_v12 = vpop.f32.mrf.mxu0  ;;  %v993_v14 = vadd.f32 %v992_v11, %v631_v9 }
 0x283   :  { %v994_v13 = vpop.f32.mrf.mxu1 }
 0x284   :  { %v995_v15 = vadd.f32 %v994_v13, %v635_v10  ;;  %v1037_v16 = vpop.f32.mrf.mxu0  ;;  %v1036_v22 = vadd.f32 %v1035_v12, %v993_v14 }
 0x285   :  { %v996_v17 = vpop.f32.mrf.mxu1 }
 0x286   :  { %v997_v18 = vadd.f32 %v996_v17, %v631_v9  ;;  %v1039_v19 = vpop.f32.mrf.mxu0  ;;  %v1038_v20 = vadd.f32 %v1037_v16, %v995_v15  ;;  %v1048_v6 = vmul.f32 0.01, %v1036_v22  ;;  %vm1044_vm12 = vcmp.gt.f32.partialorder %v1036_v22, 0.0 }
 0x287   :  { %v998_v21 = vpop.f32.mrf.mxu1 }
 0x288   :  { %v1040_v23 = vadd.f32 %v1039_v19, %v997_v18  ;;  %v999_v24 = vadd.f32 %v998_v21, %v635_v10  ;;  %v1041_v26 = vpop.f32.mrf.mxu0  ;;  %v1049_v4 = vmul.f32 0.01, %v1038_v20  ;;  %vm1045_vm11 = vcmp.gt.f32.partialorder %v1038_v20, 0.0 }
 0x289   :  { %v1052_v31 = vsel %vm1044_vm12, %v1036_v22, %v1048_v6 }
 0x28a   :  { %v1050_v25 = vmul.f32 0.01, %v1040_v23  ;;  %vm1046_vm10 = vcmp.gt.f32.partialorder %v1040_v23, 0.0  ;;  %v1042_v3 = vadd.f32 %v1041_v26, %v999_v24  ;;  %v1053_v29 = vsel %vm1045_vm11, %v1038_v20, %v1049_v4 }
 0x28c   :  { %vm1047_vm13 = vcmp.gt.f32.partialorder %v1042_v3, 0.0  ;;  %v1051_v27 = vmul.f32 0.01, %v1042_v3  ;;  %v1054_v28 = vsel %vm1046_vm10, %v1040_v23, %v1050_v25 }
 0x28d   :  { %v1056_v33 = vpack.c.bf16 %v1054_v28, %v1052_v31 }
 0x28e   :  { %v1055_v30 = vsel %vm1047_vm13, %v1042_v3, %v1051_v27 }
 0x28f   :  { %v1057_v32 = vpack.c.bf16 %v1055_v30, %v1053_v29 }
 0x291   :  { %1225 = vmatprep.mubr.bf16.mxu1 %v1057_v32 }
 0x292   :  { %1226 = vmatmul.mubr.bf16.vlgmr.msra.gmra.mxu1 %v1056_v33 }
 0x352   :  { %v1538_v38 = vpop.f32.mrf.mxu1 }
 0x354   :  { %v1539_v40 = vpop.f32.mrf.mxu1 }
 0x355   :  { %v1540_v41 = vadd.f32 %v1539_v40, %v1538_v38 }
 0x356   :  { %v1541_v42 = vpop.f32.mrf.mxu1 }
 0x357   :  { %v1228_v43 = vadd.f32 %v1540_v41, %v1474_v39 }
 0x358   :  { %v1542_v44 = vpop.f32.mrf.mxu1 }
 0x359   :  { %v1543_v45 = vadd.f32 %v1542_v44, %v1541_v42  ;;  %v1236_v46 = vmul.f32 0.01, %v1228_v43  ;;  %vm1234_vm15 = vcmp.gt.f32.partialorder %v1228_v43, 0.0 }
 0x35b   :  { %v1231_v47 = vadd.f32 %v1543_v45, %v1474_v39  ;;  %v1238_v49 = vsel %vm1234_vm15, %v1228_v43, %v1236_v46 }
 0x35d   :  { %vm1235_vm0 = vcmp.gt.f32.partialorder %v1231_v47, 0.0  ;;  %v1237_v48 = vmul.f32 0.01, %v1231_v47 }
 0x35f   :  { %v1239_v50 = vsel %vm1235_vm0, %v1231_v47, %v1237_v48 }
 0x360   :  { %v1240_v51 = vpack.c.bf16 %v1239_v50, %v1238_v49 }
 0x362   :  { %1570 = vmatmul.mubr.bf16.vlgmr.msra.gmra.mxu0 %v1240_v51 }
 0x422   :  { %v1346_v53 = vpop.f32.mrf.mxu0 }
 0x423   :  { %v1347_v54 = vadd.f32 %v1491_v52, %v1346_v53 }
 0x424   :  { %v1571_v55 = vpop.f32.mrf.mxu0 }
 0x425   :  { %1353 = vst [vmem:[%s2287_s11] sm:$0xff] %v1347_v54 }
 0x426   :  { %v1349_v56 = vpop.f32.mrf.mxu0 }
 0x427   :  { %v1350_v57 = vadd.f32 %v1491_v52, %v1349_v56 }
 0x428   :  { %v1572_v58 = vpop.f32.mrf.mxu0 }
 0x429   :  { %1354 = vst [vmem:[%s2287_s11 + $0x8] sm:$0xff] %v1350_v57 }

</bundles_post_ra>
